<compile_context>
chip_gen: v7x
topology: tpu7x:2x2x1
jax: 0.10.0
libtpu: 0.0.40
codegen_flags: <defaults>
</compile_context>

<pallas_src>
import functools

import jax
import jax.numpy as jnp
import numpy as np
from jax import lax
from jax.experimental import pallas as pl
from jax.experimental.pallas import tpu as pltpu


def _shift_up_one(a):
    """out[r] = a[r+1] (circular). The wrapped row is masked by the caller."""
    m = a.shape[0]
    if a.dtype.itemsize >= 4:
        # Native sublane rotate (XLU slot, essentially free for 32-bit types).
        return pltpu.roll(a, shift=m - 1, axis=0)
    # Packed (bf16) sublane rotate support varies across Mosaic versions; a slice+concat
    # is always supported and stays in bf16 (one small in-VMEM repack).
    return jnp.concatenate([a[1:], a[:1]], axis=0)


def us_kernel(xt_ref, xh_ref, w_ref, scale_ref, shift_ref, o_ref, *, width):
    # xt_ref:    (1, TH*W, Cin)        bf16  row tile, rows flattened as m*W + n
    # xh_ref:    (1, W, Cin)           bf16  halo = first row of NEXT tile (garbage on last)
    # w_ref:     (6, Cin, 2*Cout)      bf16  [e_x00, e_x01, o_x00, o_x01, o_x10, o_x11]
    # scale_ref: (1, 2*Cout)           f32   BN scale, tiled over the 2 column-parity blocks
    # shift_ref: (1, 2*Cout)           f32   fused (bias - mean)*scale + beta
    # o_ref:     (1, 2*TH, W, 2*Cout)  bf16  even/odd output rows interleaved along dim 1,
    #                                        even/odd output columns packed in the last dim
    i = pl.program_id(1)
    is_last_tile = i == pl.num_programs(1) - 1

    x00 = xt_ref[0]                                              # (M, Cin) bf16: x[m, n]
    halo = xh_ref[0]                                             # (W, Cin) bf16: x[r0+TH, n]
    halo = jnp.where(is_last_tile, jnp.zeros_like(halo), halo)   # bottom image boundary -> 0

    M = x00.shape[0]
    th = M // width

    # Last-column mask as (M, 1): the "+1 column" taps are outside the image at n == W-1.
    # Lane-broadcast inside the selects below is free.
    col = lax.broadcasted_iota(jnp.int32, (M, 1), 0) % width
    not_last_col = col != (width - 1)

    zero = jnp.zeros_like(x00)
    x01 = jnp.where(not_last_col, _shift_up_one(x00), zero)      # x[m,   n+1]
    x10 = jnp.concatenate([x00[width:, :], halo], axis=0)        # x[m+1, n  ]
    x11 = jnp.where(not_last_col, _shift_up_one(x10), zero)      # x[m+1, n+1]

    # Parity decomposition of ConvTranspose2d(k=3, s=2, p=1, op=1):
    #   even output row, cols [ee|eo]: x00@[W11|W12] + x01@[0|W10]
    #   odd  output row, cols [oe|oo]: x00@[W21|W22] + x01@[0|W20] + x10@[W01|W02] + x11@[0|W00]
    f32 = jnp.float32
    ye = (jnp.dot(x00, w_ref[0], preferred_element_type=f32) +
          jnp.dot(x01, w_ref[1], preferred_element_type=f32))            # (M, 2*Cout)
    yo = (jnp.dot(x00, w_ref[2], preferred_element_type=f32) +
          jnp.dot(x01, w_ref[3], preferred_element_type=f32) +
          jnp.dot(x10, w_ref[4], preferred_element_type=f32) +
          jnp.dot(x11, w_ref[5], preferred_element_type=f32))            # (M, 2*Cout)

    # Fused inference BatchNorm + ReLU epilogue in f32, store in bf16.
    scale = scale_ref[...]
    shift = shift_ref[...]
    ye = jnp.maximum(ye * scale + shift, 0.0)
    yo = jnp.maximum(yo * scale + shift, 0.0)

    c2 = ye.shape[-1]
    ye2 = ye.astype(o_ref.dtype).reshape(th, width, c2)
    yo2 = yo.astype(o_ref.dtype).reshape(th, width, c2)
    # Interleave even/odd output rows in-register (leading-dim stack/reshape, no relayout)
    # and store the whole block with one write.
    o_ref[0] = jnp.stack([ye2, yo2], axis=1).reshape(2 * th, width, c2)


def _vmem_capacity_bytes():
    try:
        return int(pltpu.get_tpu_info().vmem_capacity_bytes)
    except Exception:
        return 64 * 1024 * 1024          # conservative default (v7x per-core VMEM)


def _choose_row_tile(H, W, Cin, Cout, budget_bytes):
    """Largest divisor of H whose per-tile working set fits the VMEM budget."""
    # Per image row (W pixels):
    #   input block (bf16, double-buffered)        : 4*W*Cin
    #   shifted-view temps x01/x10/x11 (+slack)    : 8*W*Cin
    #   ye/yo f32 accumulators (2 x 2*Cout)        : 16*W*Cout
    #   output block (bf16, 4*Cout, double-buffered): 16*W*Cout
    per_row = W * (12 * Cin + 32 * Cout)
    # Grid-invariant operands (weight double-buffered) + slack.
    fixed = 2 * (6 * Cin * 2 * Cout * 2) + 64 * 1024
    th_max = max(1, min(H, (budget_bytes - fixed) // max(per_row, 1)))
    for th in range(int(th_max), 0, -1):
        if H % th == 0:
            return th
    return 1


def us_forward_nhwc(x_nhwc, weight, bias, gamma, beta, running_mean, running_var,
                    eps=1e-5, row_tile=None, out_dtype=jnp.bfloat16):
    """US forward in NHWC: ConvTranspose2d(3, s=2, p=1, op=1) + BatchNorm (inference) + ReLU.

    x_nhwc: (N, H, W, Cin); weight: (Cin, Cout, 3, 3) PyTorch ConvTranspose2d layout.
    Returns (N, 2H, 2W, Cout) in `out_dtype` (bf16 by default to halve output HBM traffic).
    """
    N, H, W, Cin = x_nhwc.shape
    Cout = weight.shape[1]
    assert weight.shape == (Cin, Cout, 3, 3), weight.shape
    assert W % 8 == 0, "W must be a multiple of 8 (sublane tiling of the flattened rows)"

    cap = _vmem_capacity_bytes()
    budget = int(min(max(cap // 3, 8 << 20), 40 << 20))
    vmem_limit = int(max(32 << 20, min(3 * budget, cap * 3 // 4)))

    TH = _choose_row_tile(H, W, Cin, Cout, budget) if row_tile is None else int(row_tile)
    assert H % TH == 0, (H, TH)
    n_tiles = H // TH
    M = TH * W

    # Inference BatchNorm: y = (conv + bias - mean) * scale + beta  ->  conv*scale + shift
    scale = (gamma / jnp.sqrt(running_var + eps)).astype(jnp.float32)
    shift = ((bias - running_mean) * scale + beta).astype(jnp.float32)
    scale2 = jnp.tile(scale, 2).reshape(1, 2 * Cout)
    shift2 = jnp.tile(shift, 2).reshape(1, 2 * Cout)

    # Weight slices (6, Cin, 2*Cout); columns of each slice are [even-col | odd-col] classes.
    #   ee: x00@W11                 eo: x00@W12 + x01@W10
    #   oe: x00@W21 + x10@W01       oo: x00@W22 + x01@W20 + x10@W02 + x11@W00
    Wt = jnp.transpose(weight.astype(jnp.float32), (2, 3, 0, 1))   # (3, 3, Cin, Cout)
    Z = jnp.zeros((Cin, Cout), jnp.float32)
    w6 = jnp.stack([
        jnp.concatenate([Wt[1, 1], Wt[1, 2]], axis=1),   # even rows, from x00
        jnp.concatenate([Z,        Wt[1, 0]], axis=1),   # even rows, from x01
        jnp.concatenate([Wt[2, 1], Wt[2, 2]], axis=1),   # odd  rows, from x00
        jnp.concatenate([Z,        Wt[2, 0]], axis=1),   # odd  rows, from x01
        jnp.concatenate([Wt[0, 1], Wt[0, 2]], axis=1),   # odd  rows, from x10
        jnp.concatenate([Z,        Wt[0, 0]], axis=1),   # odd  rows, from x11
    ], axis=0).astype(jnp.bfloat16)                      # (6, Cin, 2*Cout)

    # (N, H, W, Cin) -> (N, H*W, Cin) is metadata-only; bf16 halves the input DMA bytes.
    x_flat = x_nhwc.reshape(N, H * W, Cin).astype(jnp.bfloat16)

    kernel = functools.partial(us_kernel, width=W)
    out = pl.pallas_call(
        kernel,
        out_shape=jax.ShapeDtypeStruct((N, 2 * H, W, 2 * Cout), out_dtype),
        grid_spec=pltpu.PrefetchScalarGridSpec(
            num_scalar_prefetch=0,
            grid=(N, n_tiles),
            in_specs=[
                # row tile: flattened rows [i*TH*W, (i+1)*TH*W)
                pl.BlockSpec((1, M, Cin), lambda b, i: (b, i, 0)),
                # halo: first W flattened rows of the next tile (clamped on the last tile;
                # zeroed in-kernel)
                pl.BlockSpec((1, W, Cin),
                             lambda b, i: (b, jnp.minimum((i + 1) * TH, H - 1), 0)),
                # grid-invariant operands (constant index maps -> fetched once per buffer)
                pl.BlockSpec((6, Cin, 2 * Cout), lambda b, i: (0, 0, 0)),
                pl.BlockSpec((1, 2 * Cout), lambda b, i: (0, 0)),
                pl.BlockSpec((1, 2 * Cout), lambda b, i: (0, 0)),
            ],
            out_specs=pl.BlockSpec((1, 2 * TH, W, 2 * Cout), lambda b, i: (b, i, 0, 0)),
        ),
        compiler_params=pltpu.CompilerParams(
            dimension_semantics=("parallel", "parallel"),
            vmem_limit_bytes=vmem_limit,
        ),
    )(x_flat, x_flat, w6, scale2, shift2)

    # (N, 2H, W, 2, Cout) -> (N, 2H, 2W, Cout): contiguous split/merge, metadata-only.
    return out.reshape(N, 2 * H, 2 * W, Cout)


def us_forward(x_nchw, weight, bias, gamma, beta, running_mean, running_var,
               eps=1e-5, row_tile=None, out_dtype=jnp.bfloat16):
    """NCHW adapter matching the PyTorch module interface (layout glue only)."""
    x_nhwc = jnp.transpose(x_nchw, (0, 2, 3, 1))
    y = us_forward_nhwc(x_nhwc, weight, bias, gamma, beta, running_mean, running_var,
                        eps=eps, row_tile=row_tile, out_dtype=out_dtype)
    return jnp.transpose(y, (0, 3, 1, 2))


def us_reference(x, weight, bias, gamma, beta, mean, var, eps=1e-5):
    """Pure-JAX f32 reference: ConvTranspose2d via lhs-dilated conv + eval BN + ReLU."""
    wf = jnp.flip(weight, axis=(2, 3))
    wf = jnp.transpose(wf, (1, 0, 2, 3))              # (Cout, Cin, 3, 3) OIHW
    y = lax.conv_general_dilated(
        x.astype(jnp.float32), wf.astype(jnp.float32),
        window_strides=(1, 1), padding=[(1, 2), (1, 2)], lhs_dilation=(2, 2),
        dimension_numbers=("NCHW", "OIHW", "NCHW"))
    y = y + bias[None, :, None, None]
    scale = gamma / jnp.sqrt(var + eps)
    y = (y - mean[None, :, None, None]) * scale[None, :, None, None] + beta[None, :, None, None]
    return jnp.maximum(y, 0.0)


if __name__ == "__main__":
    # small shapes consistent with the module: batch=2, in_dim=4, out_dim=8, spatial=16
    N, Cin, Cout, H, W = 2, 4, 8, 16, 16

    key = jax.random.PRNGKey(0)
    kx, kw, kb, kg, kbe, km, kv = jax.random.split(key, 7)

    x = jax.random.normal(kx, (N, Cin, H, W), jnp.float32)
    weight = jax.random.normal(kw, (Cin, Cout, 3, 3), jnp.float32) * 0.2  # ConvTranspose2d weight
    bias = jax.random.normal(kb, (Cout,), jnp.float32) * 0.1
    gamma = 1.0 + 0.1 * jax.random.normal(kg, (Cout,), jnp.float32)       # BN weight
    beta = 0.1 * jax.random.normal(kbe, (Cout,), jnp.float32)             # BN bias
    running_mean = 0.1 * jax.random.normal(km, (Cout,), jnp.float32)
    running_var = 1.0 + 0.1 * jax.nn.softplus(jax.random.normal(kv, (Cout,), jnp.float32))

    ref = jax.block_until_ready(
        us_reference(x, weight, bias, gamma, beta, running_mean, running_var))

    # Default (single-tile) schedule and an explicit 2-tile row schedule
    # (the latter exercises the halo-row path).
    for rt in (None, 8):
        out = jax.block_until_ready(
            us_forward(x, weight, bias, gamma, beta, running_mean, running_var,
                       row_tile=rt))
        assert out.shape == (N, Cout, 2 * H, 2 * W), out.shape
        # bf16 matmul operands + bf16 output store (f32 accumulation/epilogue)
        np.testing.assert_allclose(np.asarray(out.astype(jnp.float32)), np.asarray(ref),
                                   rtol=2e-2, atol=2e-2)

    print("KERNEL_OK")
</pallas_src>

<mosaic_0001>
module attributes {stable_mosaic.version = 11 : i64} {
  func.func @us_kernel(%arg0: i32, %arg1: i32, %arg2: memref<1x256x4xbf16, #tpu.memory_space<vmem>>, %arg3: memref<1x16x4xbf16, #tpu.memory_space<vmem>>, %arg4: memref<6x4x16xbf16, #tpu.memory_space<vmem>>, %arg5: memref<1x16xf32, #tpu.memory_space<vmem>>, %arg6: memref<1x16xf32, #tpu.memory_space<vmem>>, %arg7: memref<1x32x16x16xbf16, #tpu.memory_space<vmem>>) attributes {dimension_semantics = [#tpu.dimension_semantics<parallel>, #tpu.dimension_semantics<parallel>], iteration_bounds = array<i64: 2, 1>, scalar_prefetch = 0 : i64, scratch_operands = 0 : i64, tpu.core_type = #tpu.core_type<tc>, window_params = [{transform_indices = @transform_0, window_bounds = array<i64: 1, 256, 4>}, {transform_indices = @transform_1, window_bounds = array<i64: 1, 16, 4>}, {pipeline_mode = #tpu.pipeline_mode<synchronous>, transform_indices = @transform_2, window_bounds = array<i64: 6, 4, 16>}, {pipeline_mode = #tpu.pipeline_mode<synchronous>, transform_indices = @transform_3, window_bounds = array<i64: 1, 16>}, {pipeline_mode = #tpu.pipeline_mode<synchronous>, transform_indices = @transform_4, window_bounds = array<i64: 1, 16>}, {transform_indices = @transform_5, window_bounds = array<i64: 1, 32, 16, 16>}]} {
    %c0_i32 = arith.constant 0 : i32
    %0 = arith.cmpi eq, %arg1, %c0_i32 : i32
    %c0 = arith.constant 0 : index
    %c0_0 = arith.constant 0 : index
    %c0_1 = arith.constant 0 : index
    %1 = vector.load %arg2[%c0, %c0_0, %c0_1] : memref<1x256x4xbf16, #tpu.memory_space<vmem>>, vector<1x256x4xbf16>
    %2 = vector.shape_cast %1 : vector<1x256x4xbf16> to vector<256x4xbf16>
    %c0_2 = arith.constant 0 : index
    %c0_3 = arith.constant 0 : index
    %c0_4 = arith.constant 0 : index
    %3 = vector.load %arg3[%c0_2, %c0_3, %c0_4] : memref<1x16x4xbf16, #tpu.memory_space<vmem>>, vector<1x16x4xbf16>
    %4 = vector.shape_cast %3 : vector<1x16x4xbf16> to vector<16x4xbf16>
    %cst = arith.constant 0.000000e+00 : bf16
    %5 = vector.broadcast %cst : bf16 to vector<16x4xbf16>
    %6 = arith.select %0, %5, %4 : vector<16x4xbf16>
    %7 = tpu.iota {dimensions = array<i32: 0>} : vector<256x1xi32>
    %c16_i32 = arith.constant 16 : i32
    %c0_i32_5 = arith.constant 0 : i32
    %8 = arith.cmpi eq, %c16_i32, %c0_i32_5 : i32
    %c1_i32 = arith.constant 1 : i32
    %9 = arith.select %8, %c1_i32, %c16_i32 : i32
    %10 = vector.broadcast %9 : i32 to vector<256x1xi32>
    %11 = arith.remsi %7, %10 : vector<256x1xi32>
    %c0_i32_6 = arith.constant 0 : i32
    %12 = vector.broadcast %c0_i32_6 : i32 to vector<256x1xi32>
    %13 = arith.cmpi ne, %11, %12 : vector<256x1xi32>
    %c0_i32_7 = arith.constant 0 : i32
    %14 = vector.broadcast %c0_i32_7 : i32 to vector<256x1xi32>
    %15 = arith.cmpi slt, %11, %14 : vector<256x1xi32>
    %c0_i32_8 = arith.constant 0 : i32
    %16 = arith.cmpi slt, %9, %c0_i32_8 : i32
    %17 = vector.broadcast %16 : i1 to vector<256x1xi1>
    %18 = vector.broadcast %17 : vector<256x1xi1> to vector<256x1xi1>
    %19 = arith.xori %15, %18 : vector<256x1xi1>
    %20 = arith.andi %19, %13 : vector<256x1xi1>
    %21 = vector.broadcast %9 : i32 to vector<256x1xi32>
    %22 = arith.addi %11, %21 : vector<256x1xi32>
    %23 = arith.select %20, %22, %11 : vector<256x1xi1>, vector<256x1xi32>
    %c15_i32 = arith.constant 15 : i32
    %24 = vector.broadcast %c15_i32 : i32 to vector<256x1xi32>
    %25 = arith.cmpi ne, %23, %24 : vector<256x1xi32>
    %cst_9 = arith.constant 0.000000e+00 : bf16
    %26 = vector.broadcast %cst_9 : bf16 to vector<256x4xbf16>
    %27 = vector.extract_strided_slice %2 {offsets = [1, 0], sizes = [255, 4], strides = [1, 1]} : vector<256x4xbf16> to vector<255x4xbf16>
    %28 = vector.extract_strided_slice %2 {offsets = [0, 0], sizes = [1, 4], strides = [1, 1]} : vector<256x4xbf16> to vector<1x4xbf16>
    %29 = tpu.concatenate %27, %28 in 0 : vector<255x4xbf16>, vector<1x4xbf16> -> vector<256x4xbf16>
    %30 = vector.shape_cast %25 : vector<256x1xi1> to vector<256x1xi1>
    %31 = vector.broadcast %30 : vector<256x1xi1> to vector<256x4xi1>
    %32 = arith.select %31, %29, %26 : vector<256x4xi1>, vector<256x4xbf16>
    %33 = vector.extract_strided_slice %2 {offsets = [16, 0], sizes = [240, 4], strides = [1, 1]} : vector<256x4xbf16> to vector<240x4xbf16>
    %34 = tpu.concatenate %33, %6 in 0 : vector<240x4xbf16>, vector<16x4xbf16> -> vector<256x4xbf16>
    %35 = vector.extract_strided_slice %34 {offsets = [1, 0], sizes = [255, 4], strides = [1, 1]} : vector<256x4xbf16> to vector<255x4xbf16>
    %36 = vector.extract_strided_slice %34 {offsets = [0, 0], sizes = [1, 4], strides = [1, 1]} : vector<256x4xbf16> to vector<1x4xbf16>
    %37 = tpu.concatenate %35, %36 in 0 : vector<255x4xbf16>, vector<1x4xbf16> -> vector<256x4xbf16>
    %38 = vector.shape_cast %25 : vector<256x1xi1> to vector<256x1xi1>
    %39 = vector.broadcast %38 : vector<256x1xi1> to vector<256x4xi1>
    %40 = arith.select %39, %37, %26 : vector<256x4xi1>, vector<256x4xbf16>
    %c0_10 = arith.constant 0 : index
    %c0_11 = arith.constant 0 : index
    %c0_12 = arith.constant 0 : index
    %41 = vector.load %arg4[%c0_10, %c0_11, %c0_12] : memref<6x4x16xbf16, #tpu.memory_space<vmem>>, vector<1x4x16xbf16>
    %42 = vector.shape_cast %41 : vector<1x4x16xbf16> to vector<4x16xbf16>
    %cst_13 = arith.constant dense<0.000000e+00> : vector<256x16xf32>
    %43 = tpu.matmul %2, %42, %cst_13 {dimension_numbers = #tpu.dot_dimension_numbers<[1], [0], [0], [1], [0, 0, 1, 1], [], []>} : vector<256x4xbf16>, vector<4x16xbf16>, vector<256x16xf32> -> vector<256x16xf32>
    %c1 = arith.constant 1 : index
    %c0_14 = arith.constant 0 : index
    %c0_15 = arith.constant 0 : index
    %44 = vector.load %arg4[%c1, %c0_14, %c0_15] : memref<6x4x16xbf16, #tpu.memory_space<vmem>>, vector<1x4x16xbf16>
    %45 = vector.shape_cast %44 : vector<1x4x16xbf16> to vector<4x16xbf16>
    %cst_16 = arith.constant dense<0.000000e+00> : vector<256x16xf32>
    %46 = tpu.matmul %32, %45, %cst_16 {dimension_numbers = #tpu.dot_dimension_numbers<[1], [0], [0], [1], [0, 0, 1, 1], [], []>} : vector<256x4xbf16>, vector<4x16xbf16>, vector<256x16xf32> -> vector<256x16xf32>
    %47 = arith.addf %43, %46 : vector<256x16xf32>
    %c2 = arith.constant 2 : index
    %c0_17 = arith.constant 0 : index
    %c0_18 = arith.constant 0 : index
    %48 = vector.load %arg4[%c2, %c0_17, %c0_18] : memref<6x4x16xbf16, #tpu.memory_space<vmem>>, vector<1x4x16xbf16>
    %49 = vector.shape_cast %48 : vector<1x4x16xbf16> to vector<4x16xbf16>
    %cst_19 = arith.constant dense<0.000000e+00> : vector<256x16xf32>
    %50 = tpu.matmul %2, %49, %cst_19 {dimension_numbers = #tpu.dot_dimension_numbers<[1], [0], [0], [1], [0, 0, 1, 1], [], []>} : vector<256x4xbf16>, vector<4x16xbf16>, vector<256x16xf32> -> vector<256x16xf32>
    %c3 = arith.constant 3 : index
    %c0_20 = arith.constant 0 : index
    %c0_21 = arith.constant 0 : index
    %51 = vector.load %arg4[%c3, %c0_20, %c0_21] : memref<6x4x16xbf16, #tpu.memory_space<vmem>>, vector<1x4x16xbf16>
    %52 = vector.shape_cast %51 : vector<1x4x16xbf16> to vector<4x16xbf16>
    %cst_22 = arith.constant dense<0.000000e+00> : vector<256x16xf32>
    %53 = tpu.matmul %32, %52, %cst_22 {dimension_numbers = #tpu.dot_dimension_numbers<[1], [0], [0], [1], [0, 0, 1, 1], [], []>} : vector<256x4xbf16>, vector<4x16xbf16>, vector<256x16xf32> -> vector<256x16xf32>
    %54 = arith.addf %50, %53 : vector<256x16xf32>
    %c4 = arith.constant 4 : index
    %c0_23 = arith.constant 0 : index
    %c0_24 = arith.constant 0 : index
    %55 = vector.load %arg4[%c4, %c0_23, %c0_24] : memref<6x4x16xbf16, #tpu.memory_space<vmem>>, vector<1x4x16xbf16>
    %56 = vector.shape_cast %55 : vector<1x4x16xbf16> to vector<4x16xbf16>
    %cst_25 = arith.constant dense<0.000000e+00> : vector<256x16xf32>
    %57 = tpu.matmul %34, %56, %cst_25 {dimension_numbers = #tpu.dot_dimension_numbers<[1], [0], [0], [1], [0, 0, 1, 1], [], []>} : vector<256x4xbf16>, vector<4x16xbf16>, vector<256x16xf32> -> vector<256x16xf32>
    %58 = arith.addf %54, %57 : vector<256x16xf32>
    %c5 = arith.constant 5 : index
    %c0_26 = arith.constant 0 : index
    %c0_27 = arith.constant 0 : index
    %59 = vector.load %arg4[%c5, %c0_26, %c0_27] : memref<6x4x16xbf16, #tpu.memory_space<vmem>>, vector<1x4x16xbf16>
    %60 = vector.shape_cast %59 : vector<1x4x16xbf16> to vector<4x16xbf16>
    %cst_28 = arith.constant dense<0.000000e+00> : vector<256x16xf32>
    %61 = tpu.matmul %40, %60, %cst_28 {dimension_numbers = #tpu.dot_dimension_numbers<[1], [0], [0], [1], [0, 0, 1, 1], [], []>} : vector<256x4xbf16>, vector<4x16xbf16>, vector<256x16xf32> -> vector<256x16xf32>
    %62 = arith.addf %58, %61 : vector<256x16xf32>
    %c0_29 = arith.constant 0 : index
    %c0_30 = arith.constant 0 : index
    %63 = vector.load %arg5[%c0_29, %c0_30] : memref<1x16xf32, #tpu.memory_space<vmem>>, vector<1x16xf32>
    %c0_31 = arith.constant 0 : index
    %c0_32 = arith.constant 0 : index
    %64 = vector.load %arg6[%c0_31, %c0_32] : memref<1x16xf32, #tpu.memory_space<vmem>>, vector<1x16xf32>
    %65 = vector.broadcast %63 : vector<1x16xf32> to vector<256x16xf32>
    %66 = arith.mulf %47, %65 : vector<256x16xf32>
    %67 = vector.broadcast %64 : vector<1x16xf32> to vector<256x16xf32>
    %68 = arith.addf %66, %67 : vector<256x16xf32>
    %cst_33 = arith.constant 0.000000e+00 : f32
    %69 = vector.broadcast %cst_33 : f32 to vector<256x16xf32>
    %70 = arith.maximumf %68, %69 : vector<256x16xf32>
    %71 = vector.broadcast %63 : vector<1x16xf32> to vector<256x16xf32>
    %72 = arith.mulf %62, %71 : vector<256x16xf32>
    %73 = vector.broadcast %64 : vector<1x16xf32> to vector<256x16xf32>
    %74 = arith.addf %72, %73 : vector<256x16xf32>
    %cst_34 = arith.constant 0.000000e+00 : f32
    %75 = vector.broadcast %cst_34 : f32 to vector<256x16xf32>
    %76 = arith.maximumf %74, %75 : vector<256x16xf32>
    %77 = arith.truncf %70 : vector<256x16xf32> to vector<256x16xbf16>
    %78 = vector.shape_cast %77 : vector<256x16xbf16> to vector<16x16x16xbf16>
    %79 = arith.truncf %76 : vector<256x16xf32> to vector<256x16xbf16>
    %80 = vector.shape_cast %79 : vector<256x16xbf16> to vector<16x16x16xbf16>
    %81 = vector.shape_cast %78 : vector<16x16x16xbf16> to vector<16x1x16x16xbf16>
    %82 = vector.shape_cast %80 : vector<16x16x16xbf16> to vector<16x1x16x16xbf16>
    %83 = tpu.concatenate %81, %82 in 1 : vector<16x1x16x16xbf16>, vector<16x1x16x16xbf16> -> vector<16x2x16x16xbf16>
    %84 = vector.shape_cast %83 : vector<16x2x16x16xbf16> to vector<32x16x16xbf16>
    %c0_35 = arith.constant 0 : index
    %c0_36 = arith.constant 0 : index
    %c0_37 = arith.constant 0 : index
    %c0_38 = arith.constant 0 : index
    %85 = vector.load %arg7[%c0_35, %c0_36, %c0_37, %c0_38] : memref<1x32x16x16xbf16, #tpu.memory_space<vmem>>, vector<1x32x16x16xbf16>
    %86 = vector.shape_cast %85 : vector<1x32x16x16xbf16> to vector<32x16x16xbf16>
    %87 = vector.shape_cast %84 : vector<32x16x16xbf16> to vector<1x32x16x16xbf16>
    tpu.vector_store %arg7[%c0_35, %c0_36, %c0_37, %c0_38], %87 {strides = array<i32>} : memref<1x32x16x16xbf16, #tpu.memory_space<vmem>>, vector<1x32x16x16xbf16>,
    return
  }
  func.func @transform_0(%arg0: i32, %arg1: i32) -> (i32, i32, i32) {
    %c0_i32 = arith.constant 0 : i32
    %c0_i32_0 = arith.constant 0 : i32
    return %arg0, %arg1, %c0_i32 : i32, i32, i32
  }
  func.func @transform_1(%arg0: i32, %arg1: i32) -> (i32, i32, i32) {
    %c1_i32 = arith.constant 1 : i32
    %0 = arith.addi %arg1, %c1_i32 : i32
    %c16_i32 = arith.constant 16 : i32
    %1 = arith.muli %0, %c16_i32 : i32
    %c15_i32 = arith.constant 15 : i32
    %2 = arith.minsi %1, %c15_i32 : i32
    %c0_i32 = arith.constant 0 : i32
    %c0_i32_0 = arith.constant 0 : i32
    return %arg0, %2, %c0_i32 : i32, i32, i32
  }
  func.func @transform_2(%arg0: i32, %arg1: i32) -> (i32, i32, i32) {
    %c0_i32 = arith.constant 0 : i32
    %c0_i32_0 = arith.constant 0 : i32
    %c0_i32_1 = arith.constant 0 : i32
    %c0_i32_2 = arith.constant 0 : i32
    return %c0_i32, %c0_i32_0, %c0_i32_1 : i32, i32, i32
  }
  func.func @transform_3(%arg0: i32, %arg1: i32) -> (i32, i32) {
    %c0_i32 = arith.constant 0 : i32
    %c0_i32_0 = arith.constant 0 : i32
    %c0_i32_1 = arith.constant 0 : i32
    return %c0_i32, %c0_i32_0 : i32, i32
  }
  func.func @transform_4(%arg0: i32, %arg1: i32) -> (i32, i32) {
    %c0_i32 = arith.constant 0 : i32
    %c0_i32_0 = arith.constant 0 : i32
    %c0_i32_1 = arith.constant 0 : i32
    return %c0_i32, %c0_i32_0 : i32, i32
  }
  func.func @transform_5(%arg0: i32, %arg1: i32) -> (i32, i32, i32, i32) {
    %c0_i32 = arith.constant 0 : i32
    %c0_i32_0 = arith.constant 0 : i32
    %c0_i32_1 = arith.constant 0 : i32
    return %arg0, %arg1, %c0_i32, %c0_i32_0 : i32, i32, i32, i32
  }
}

</mosaic_0001>

<bundles_post_ra>
// kernel: tpu_custom_call.1
= control target key start
LH: loop header
LB: loop body
LE: loop exit
PB: predicated region body
PF: predicated region fallthrough
CT: control target
= control target key end

     0   :  { %s3946_s18 = smov 0   ;;  %s3948_s19 = smov 0   ;;  %s4941_s0 = inlined_call_operand.vmem [shape: bf16[2,256,4], index: 0, kind: input, shape index: {}]   ;;  %s4942_s1 = inlined_call_operand.vmem [shape: bf16[2,256,4], index: 1, kind: input, shape index: {}]   ;;  %s4943_s2 = inlined_call_operand.vmem [shape: bf16[6,4,16], index: 2, kind: input, shape index: {}]   ;;  %s4944_s3 = inlined_call_operand.vmem [shape: f32[1,16], index: 3, kind: input, shape index: {}]   ;;  %s4945_s4 = inlined_call_operand.vmem [shape: f32[1,16], index: 4, kind: input, shape index: {}]   ;;  %s4946_s5 = inlined_call_operand.vmem [shape: bf16[2,32,16,16], index: 5, kind: output, shape index: {}]  }
   0x1   :  { %s3950_s20 = smov 0  }
   0x2 LB: > { %s27_s1 = sadd.s32 1, %s3908_s19  ;;  %p3129_p0 = scmp.ge.s32.totalorder %s3912_s20, 1  ;;  %s3912_s20 = sphi %s3950_s20, %s15_s20   ;;  %s3908_s19 = sphi %s3948_s19, %s5122_s19   ;;  %s3904_s18 = sphi %s3946_s18, %s5121_s18  }
   0x3   : > { %p29_p1 = scmp.ge.s32.totalorder %s27_s1, 2  ;;  %p241_p2 = scmp.lt.s32.totalorder %s3912_s20, 3 }
   0x5   : > { %s5124_s1 = smov (%p29_p1, %s27_s1), 0  ;;  %p242_p3 = pnand %p3129_p0, %p241_p2 }
   0x7   : > { %245 = sbr.rel (%p242_p3) target bundleno = 442 (0x1ba), region = 40 }
   0xe   : > { %vm4947_vm0 = vcmask 1041408   ;;  %v3203_v0 = vld [vmem:[%s4943_s2 + $0x4] sm:$0x3]  ;;  %p292_p4 = scmp.lt.s32.totalorder %s3904_s18, 1  ;;  %v373_v1 = vlaneseq  ;;  %v3170_v3 = vld [vmem:[%s4943_s2 + $0x2] sm:$0x3] }
   0xf   : > { %3844 = vmatprep.subr.msk.bf16.mxu1 %vm4947_vm0, %v3203_v0  ;;  %v1878_v2 = vsel %vm4947_vm0, %v3203_v0, 0  ;;  %vm3914_vm1 = vmmov 1   ;;  %3841 = vmatprep.subr.msk.bf16.mxu0 %vm4947_vm0, %v3170_v3  ;;  %v1350_v4 = vsel %vm4947_vm0, %v3170_v3, 0  ;;  %v1296_v6 = vld [vmem:[%s4943_s2] sm:$0x3]  ;;  %vm4959_vm3 = vcmask 31744  }
  0x10   : > { %vm1119_vm2 = vmpackc.low %vm3914_vm1, %vm3914_vm1  ;;  %3612 = vmatpush3.bf16.msra.mxu1 %v1878_v2  ;;  %s5126_s18 = smov (!%p292_p4, %s3904_s18), 1  ;;  %v3976_v5 = vshrl.u32 %v373_v1, 7  ;;  %3510 = vmatpush3.bf16.msra.mxu0 %v1350_v4  ;;  %v3915_v7 = vmov 0   ;;  %v3237_v9 = vld [vmem:[%s4943_s2 + $0x8] sm:$0x3]  ;;  %v3988_v10 = vsel %vm4947_vm0, %v1296_v6, 0 }
  0x11   : > { %v3982_v8 = vsel %vm1119_vm2, 65537, %v3915_v7  ;;  %s3339_s29 = sshll.u32 %s5126_s18, 7  ;;  %vm4961_vm4 = vsmask.f32 7424  ;;  %3842 = vmatprep.subr.msk.bf16.mxu0 %vm4947_vm0, %v1296_v6  ;;  %3845 = vmatprep.subr.msk.bf16.mxu1 %vm4947_vm0, %v3237_v9  ;;  %v2046_v13 = vsel %vm4947_vm0, %v3237_v9, 0  ;;  %v4972_v52 = vmov 0 }
  0x12   : > { %v375_v11 = vadd.s32 8, %v3976_v5  ;;  %v377_v12 = vadd.s32 24, %v3976_v5  ;;  %v379_v14 = vadd.s32 40, %v3976_v5  ;;  %s4000_s7 = scalar_lea.vmem %s4941_s0, %s3339_s29  ;;  %v381_v15 = vadd.s32 56, %v3976_v5  ;;  %v4025_v24 = vld [vmem:[%s4943_s2 + $0xa] sm:$0x3] }
  0x13   : > { %v4004_v16 = vadd.s32 72, %v3976_v5  ;;  %v4007_v17 = vadd.s32 88, %v3976_v5  ;;  %v4010_v18 = vadd.s32 104, %v3976_v5  ;;  %v4013_v19 = vld [vmem:[%s4000_s7] sm:$0xf]  ;;  %v4020_v22 = vld [vmem:[%s4000_s7 + $0x8] sm:$0xff]  }
  0x14   : > { %v335_v20 = vld [vmem:[%s4000_s7 + $0x4] sm:$0xf]  ;;  %v417_v23 = vand.u32 15, %v375_v11  ;;  %v4028_v25 = vld [vmem:[%s4000_s7 + $0x10] sm:$0xff]   ;;  %v431_v26 = vand.u32 15, %v377_v12  ;;  %v911_v29 = vshll.u32 %v4020_v22, 16 }
  0x15   : > { %v4017_v21 = vcombine.low %v4013_v19, %v335_v20  ;;  %v915_v30 = vshrl.u32 %v4020_v22, 16  ;;  %v919_v31 = vshll.u32 %v4028_v25, 16  ;;  %v4040_v32 = vld [vmem:[%s4000_s7 + $0x18] sm:$0xff]   ;;  %v445_v33 = vand.u32 15, %v379_v14  ;;  %v4051_v41 = vld [vmem:[%s4000_s7 + $0x20] sm:$0xff]   ;;  %v4091_v59 = vld [vmem:[%s4000_s7 + $0x28] sm:$0xff]  }
  0x16   : > { %vm791_vm5 = vcmp.ne.s32.totalorder %v417_v23, 15  ;;  %vm793_vm7 = vcmp.ne.s32.totalorder %v431_v26, 15  ;;  %v4042_v35 = vrot.slane %v911_v29, 1  ;;  %v923_v37 = vshrl.u32 %v4028_v25, 16  ;;  %v4075_v54 = vld [vmem:[%s4943_s2 + $0x6] sm:$0x3] }
  0x17   : > { %3613 = vmatprep.mubr.msk.bf16.mxu1 %vm4959_vm3, %v4017_v21  ;;  %v904_v27 = vshrl.u32 %v4017_v21, 16  ;;  %v906_v28 = vshll.u32 %v4017_v21, 16  ;;  %vm1120_vm6 = vmpackc.low %vm791_vm5, %vm791_vm5  ;;  %v921_v38 = vrot.slane %v919_v31, 1  ;;  %vm795_vm9 = vcmp.ne.s32.totalorder %v445_v33, 15  ;;  %v4105_v0 = vld [vmem:[%s4000_s7 + $0x30] sm:$0xff]   ;;  %v4325_v2 = vld [vmem:[%s4000_s7 + $0x78] sm:$0xff]  }
  0x18   : > { %3614 = vmatmul.mubr.msk.bf16.vlgmr.msra.gmra.mrb[0].mxu1 %vm4959_vm3, %v4020_v22  ;;  %v1152_v36 = vsel %vm1120_vm6, 65537, %v3915_v7  ;;  %vm1122_vm8 = vmpackc.low %vm793_vm7, %vm793_vm7  ;;  %v917_v43 = vor.u32 %v915_v30, %v4042_v35  ;;  %v927_v45 = vshll.u32 %v4040_v32, 16  ;;  %v459_v49 = vand.u32 15, %v381_v15  ;;  %v4138_v15 = vld [vmem:[%s4000_s7 + $0x38] sm:$0xff]   ;;  %s3342_s16 = sshll.u32 %s5126_s18, 8 }
  0x19   : > { %v908_v34 = vrot.slane %v906_v28, 1  ;;  %3617 = vmatprep.mubr.msk.bf16.mxu1 %vm4959_vm3, %v4028_v25  ;;  %3646 = vmatpush3.bf16.msra.mxu1 %v2046_v13  ;;  %v3153_v39 = vcombine.low %v3982_v8, %v1152_v36  ;;  %v1154_v40 = vsel %vm1122_vm8, 65537, %v3915_v7  ;;  %vm1124_vm10 = vmpackc.low %vm795_vm9, %vm795_vm9  ;;  %v925_v47 = vor.u32 %v923_v37, %v921_v38  ;;  %s4681_s22 = scalar_lea.vmem %s4946_s5, %s3342_s16 }
  0x1a   : > { %3846 = vmatprep.subr.msk.bf16.mxu1 %vm4947_vm0, %v4025_v24  ;;  %v3154_v44 = vcombine.low %v3982_v8, %v1154_v40  ;;  %v1156_v48 = vsel %vm1124_vm10, 65537, %v3915_v7  ;;  %v4066_v51 = vsel %vm4961_vm4, %v917_v43, %v921_v38  ;;  %v929_v53 = vrot.slane %v927_v45, 1 }
  0x1b   : > { %v909_v42 = vor.u32 %v908_v34, %v904_v27  ;;  %vm4058_vm11 = vcmp.ne.s16.totalorder %v3153_v39, 0  ;;  %v3155_v58 = vcombine.low %v3982_v8, %v1156_v48  ;;  %vm4098_vm13 = vcmp.ne.s32.totalorder %v459_v49, 15  ;;  %v4160_v34 = vld [vmem:[%s4000_s7 + $0x40] sm:$0xff]  }
  0x1c   : > { %vm4068_vm12 = vcmp.ne.s16.totalorder %v3154_v44, 0  ;;  %v4096_v60 = vsel %vm4961_vm4, %v925_v47, %v929_v53  ;;  %v931_v62 = vshrl.u32 %v4040_v32, 16  ;;  %v935_v63 = vshll.u32 %v4051_v41, 16  ;;  %vm1126_vm15 = vmpackc.low %vm4098_vm13, %vm4098_vm13  ;;  %v4184_v47 = vld [vmem:[%s4000_s7 + $0x48] sm:$0xff]  }
  0x1d   : > { %v914_v50 = vsel %vm4961_vm4, %v909_v42, %v4042_v35  ;;  %v4973_v52 = vsel %vm4068_vm12, 4294967295, %v4972_v52  ;;  %v4087_v57 = vsel %vm4068_vm12, %v4066_v51, 0  ;;  %4976 = vst [vmem:[#allocation4_spill] sm:$0xff] %v4096_v60  ;;  %vm4111_vm14 = vcmp.ne.s16.totalorder %v3155_v58, 0 }
  0x1e   : > { %v4079_v55 = vsel %vm4058_vm11, %v914_v50, 0  ;;  %4975 = vst [vmem:[#allocation3_spill] sm:$0xff] %v4087_v57  ;;  %v473_v3 = vand.u32 15, %v4004_v16  ;;  %v939_v4 = vshrl.u32 %v4051_v41, 16  ;;  %v4127_v6 = vsel %vm4111_vm14, %v4096_v60, 0 }
  0x1f   : > { %4974 = vst [vmem:[#allocation2_spill] sm:$0xff] %v4079_v55  ;;  %3511 = vmatprep.mubr.msk.bf16.mxu0 %vm4959_vm3, %v4079_v55  ;;  %4981 = vst [vmem:[#allocation5_spill] sm:$0xff] %v4127_v6  ;;  %v933_v9 = vor.u32 %v931_v62, %v929_v53  ;;  %v937_v11 = vrot.slane %v935_v63, 1  ;;  %v1158_v12 = vsel %vm1126_vm15, 65537, %v3915_v7  ;;  %v487_v14 = vand.u32 15, %v4007_v17 }
  0x20   : > { %3512 = vmatmul.mubr.msk.bf16.vlgmr.msra.gmra.mrb[0].mxu0 %vm4959_vm3, %v4087_v57  ;;  %3618 = vmatmul.mubr.msk.bf16.gmra.mrb[4].mxu1 %vm4959_vm3, %v4040_v32  ;;  %v3156_v13 = vcombine.low %v3982_v8, %v1158_v12  ;;  %vm799_vm1 = vcmp.ne.s32.totalorder %v473_v3, 15  ;;  %v947_v23 = vshrl.u32 %v4091_v59, 16  ;;  %v951_v26 = vshll.u32 %v4105_v0, 16  ;;  %v4202_v3 = vld [vmem:[%s4000_s7 + $0x50] sm:$0xff]  }
  0x21   : > { %3544 = vmatpush3.bf16.msra.mxu0 %v3988_v10  ;;  %3621 = vmatprep.mubr.msk.bf16.mxu1 %vm4959_vm3, %v4051_v41  ;;  %v943_v10 = vshll.u32 %v4091_v59, 16  ;;  %v4143_v16 = vsel %vm4961_vm4, %v933_v9, %v937_v11  ;;  %v941_v20 = vor.u32 %v939_v4, %v937_v11  ;;  %vm1128_vm2 = vmpackc.low %vm799_vm1, %vm799_vm1  ;;  %vm801_vm6 = vcmp.ne.s32.totalorder %v487_v14, 15 }
  0x22   : > { %3515 = vmatprep.mubr.msk.bf16.mxu0 %vm4959_vm3, %v4127_v6  ;;  %3843 = vmatprep.subr.msk.bf16.mxu0 %vm4947_vm0, %v4075_v54  ;;  %vm4147_vm5 = vcmp.ne.s16.totalorder %v3156_v13, 0  ;;  %v1160_v28 = vsel %vm1128_vm2, 65537, %v3915_v7  ;;  %v953_v31 = vrot.slane %v951_v26, 1  ;;  %vm1130_vm7 = vmpackc.low %vm801_vm6, %vm801_vm6  ;;  %v501_v33 = vand.u32 15, %v4010_v18 }
  0x23   : > { %v945_v17 = vrot.slane %v943_v10, 1  ;;  %v4155_v29 = vsel %vm4147_vm5, %v4143_v16, 0  ;;  %v3157_v30 = vcombine.low %v3982_v8, %v1160_v28  ;;  %v1162_v38 = vsel %vm1130_vm7, 65537, %v3915_v7 }
  0x24   : > { %4984 = vst [vmem:[#allocation6_spill] sm:$0xff] %v4155_v29  ;;  %v955_v39 = vshrl.u32 %v4105_v0, 16  ;;  %v3158_v42 = vcombine.low %v3982_v8, %v1162_v38  ;;  %vm803_vm9 = vcmp.ne.s32.totalorder %v501_v33, 15  ;;  %v959_v18 = vshll.u32 %v4138_v15, 16 }
  0x25   : > { %v4163_v36 = vsel %vm4961_vm4, %v941_v20, %v945_v17  ;;  %v949_v37 = vor.u32 %v947_v23, %v945_v17  ;;  %vm4167_vm8 = vcmp.ne.s16.totalorder %v3157_v30, 0  ;;  %vm1132_vm10 = vmpackc.low %vm803_vm9, %vm803_vm9  ;;  %v389_v45 = vadd.s32 120, %v3976_v5 }
  0x26   : > { %v4180_v43 = vsel %vm4167_vm8, %v4163_v36, 0  ;;  %v957_v44 = vor.u32 %v955_v39, %v953_v31  ;;  %v961_v49 = vrot.slane %v959_v18, 1  ;;  %v1164_v50 = vsel %vm1132_vm10, 65537, %v3915_v7 }
  0x27   : > { %4987 = vst [vmem:[#allocation7_spill] sm:$0xff] %v4180_v43  ;;  %v4191_v48 = vsel %vm4961_vm4, %v949_v37, %v953_v31  ;;  %v963_v53 = vshrl.u32 %v4138_v15, 16  ;;  %vm4195_vm13 = vcmp.ne.s16.totalorder %v3158_v42, 0  ;;  %v3159_v61 = vcombine.low %v3982_v8, %v1164_v50  ;;  %v4228_v37 = vld [vmem:[%s4000_s7 + $0x58] sm:$0xff]  }
  0x28   : > { %3516 = vmatmul.mubr.msk.bf16.gmra.mrb[4].mxu0 %vm4959_vm3, %v4155_v29  ;;  %3622 = vmatmul.mubr.msk.bf16.gmra.mrb[8].mxu1 %vm4959_vm3, %v4091_v59  ;;  %v515_v62 = vand.u32 15, %v389_v45  ;;  %v967_v63 = vshll.u32 %v4160_v34, 16  ;;  %v4205_v4 = vsel %vm4961_vm4, %v957_v44, %v961_v49  ;;  %v391_v11 = vadd.s32 136, %v3976_v5 }
  0x29   : > { %3519 = vmatprep.mubr.msk.bf16.mxu0 %vm4959_vm3, %v4180_v43  ;;  %3625 = vmatprep.mubr.msk.bf16.mxu1 %vm4959_vm3, %v4105_v0  ;;  %v965_v9 = vor.u32 %v963_v53, %v961_v49  ;;  %v971_v12 = vshrl.u32 %v4160_v34, 16  ;;  %vm4209_vm15 = vcmp.ne.s16.totalorder %v3159_v61, 0  ;;  %v975_v14 = vshll.u32 %v4184_v47, 16 }
  0x2a   : > { %vm805_vm1 = vcmp.ne.s32.totalorder %v515_v62, 15  ;;  %v969_v10 = vrot.slane %v967_v63, 1  ;;  %v4217_v20 = vsel %vm4195_vm13, %v4191_v48, 0  ;;  %v529_v23 = vand.u32 15, %v391_v11 }
  0x2b   : > { %4992 = vst [vmem:[#allocation8_spill] sm:$0xff] %v4217_v20  ;;  %vm1134_vm2 = vmpackc.low %vm805_vm1, %vm805_vm1  ;;  %v393_v26 = vadd.s32 152, %v3976_v5  ;;  %v979_v17 = vshrl.u32 %v4184_v47, 16  ;;  %v4224_v28 = vsel %vm4209_vm15, %v4205_v4, 0  ;;  %v977_v33 = vrot.slane %v975_v14, 1  ;;  %v4257_v14 = vld [vmem:[%s4000_s7 + $0x60] sm:$0xff]  }
  0x2c   : > { %4993 = vst [vmem:[#allocation9_spill] sm:$0xff] %v4224_v28  ;;  %v1166_v30 = vsel %vm1134_vm2, 65537, %v3915_v7  ;;  %v973_v31 = vor.u32 %v971_v12, %v969_v10  ;;  %vm807_vm6 = vcmp.ne.s32.totalorder %v529_v23, 15  ;;  %v983_v42 = vshll.u32 %v4202_v3, 16 }
  0x2d   : > { %v3160_v38 = vcombine.low %v3982_v8, %v1166_v30  ;;  %v543_v39 = vand.u32 15, %v393_v26  ;;  %v4237_v18 = vsel %vm4961_vm4, %v965_v9, %v969_v10  ;;  %vm1136_vm7 = vmpackc.low %vm807_vm6, %vm807_vm6  ;;  %v395_v44 = vadd.s32 168, %v3976_v5 }
  0x2e   : > { %v987_v45 = vshrl.u32 %v4202_v3, 16  ;;  %v1168_v49 = vsel %vm1136_vm7, 65537, %v3915_v7  ;;  %v981_v50 = vor.u32 %v979_v17, %v977_v33  ;;  %v985_v53 = vrot.slane %v983_v42, 1 }
  0x2f   : > { %vm809_vm9 = vcmp.ne.s32.totalorder %v543_v39, 15  ;;  %vm4246_vm10 = vcmp.ne.s16.totalorder %v3160_v38, 0  ;;  %v3161_v62 = vcombine.low %v3982_v8, %v1168_v49  ;;  %v557_v63 = vand.u32 15, %v395_v44  ;;  %v4274_v39 = vld [vmem:[%s4000_s7 + $0x68] sm:$0xff]  }
  0x30   : > { %3520 = vmatmul.mubr.msk.bf16.gmra.mrb[8].mxu0 %vm4959_vm3, %v4217_v20  ;;  %3626 = vmatmul.mubr.msk.bf16.gmra.mrb[12].mxu1 %vm4959_vm3, %v4138_v15  ;;  %vm1138_vm1 = vmpackc.low %vm809_vm9, %vm809_vm9  ;;  %v991_v9 = vshll.u32 %v4228_v37, 16  ;;  %v4253_v11 = vsel %vm4961_vm4, %v973_v31, %v977_v33  ;;  %v989_v10 = vor.u32 %v987_v45, %v985_v53  ;;  %v397_v23 = vadd.s32 184, %v3976_v5 }
  0x31   : > { %3523 = vmatprep.mubr.msk.bf16.mxu0 %vm4959_vm3, %v4224_v28  ;;  %3629 = vmatprep.mubr.msk.bf16.mxu1 %vm4959_vm3, %v4160_v34  ;;  %v1170_v12 = vsel %vm1138_vm1, 65537, %v3915_v7  ;;  %vm4260_vm2 = vcmp.ne.s16.totalorder %v3161_v62, 0  ;;  %vm811_vm6 = vcmp.ne.s32.totalorder %v557_v63, 15  ;;  %v4268_v31 = vsel %vm4246_vm10, %v4237_v18, 0 }
  0x32   : > { %v3162_v17 = vcombine.low %v3982_v8, %v1170_v12  ;;  %v993_v30 = vrot.slane %v991_v9, 1  ;;  %4998 = vst [vmem:[#allocation10_spill] sm:$0xff] %v4268_v31  ;;  %v4271_v33 = vsel %vm4961_vm4, %v981_v50, %v985_v53  ;;  %vm1140_vm7 = vmpackc.low %vm811_vm6, %vm811_vm6  ;;  %v571_v38 = vand.u32 15, %v397_v23  ;;  %v4305_v23 = vld [vmem:[%s4000_s7 + $0x70] sm:$0xff]  }
  0x33   : > { %v4279_v42 = vsel %vm4260_vm2, %v4253_v11, 0  ;;  %v1172_v44 = vsel %vm1140_vm7, 65537, %v3915_v7  ;;  %v995_v45 = vshrl.u32 %v4228_v37, 16  ;;  %v399_v49 = vadd.s32 200, %v3976_v5 }
  0x34   : > { %4999 = vst [vmem:[#allocation11_spill] sm:$0xff] %v4279_v42  ;;  %vm4284_vm9 = vcmp.ne.s16.totalorder %v3162_v17, 0  ;;  %v5000_v62 = vmov 0  ;;  %v3163_v50 = vcombine.low %v3982_v8, %v1172_v44  ;;  %vm4289_vm1 = vcmp.ne.s32.totalorder %v571_v38, 15 }
  0x35   : > { %v5001_v62 = vsel %vm4284_vm9, 4294967295, %v5000_v62  ;;  %v999_v63 = vshll.u32 %v4257_v14, 16  ;;  %v4299_v9 = vsel %vm4961_vm4, %v989_v10, %v993_v30  ;;  %vm1142_vm6 = vmpackc.low %vm4289_vm1, %vm4289_vm1  ;;  %v585_v12 = vand.u32 15, %v399_v49 }
  0x36   : > { %vm4311_vm7 = vcmp.ne.s16.totalorder %v3163_v50, 0  ;;  %v5004_v17 = vmov 0  ;;  %v1003_v10 = vshrl.u32 %v4257_v14, 16  ;;  %v1007_v38 = vshll.u32 %v4274_v39, 16 }
  0x37   : > { %v5005_v17 = vsel %vm4311_vm7, 4294967295, %v5004_v17  ;;  %v401_v44 = vadd.s32 216, %v3976_v5  ;;  %v4321_v49 = vsel %vm4284_vm9, %v4271_v33, 0  ;;  %v1174_v53 = vsel %vm1142_vm6, 65537, %v3915_v7 }
  0x38   : > { %3524 = vmatmul.mubr.msk.bf16.gmra.mrb[12].mxu0 %vm4959_vm3, %v4268_v31  ;;  %3630 = vmatmul.mubr.msk.bf16.gmra.mrb[16].mxu1 %vm4959_vm3, %v4184_v47  ;;  %vm815_vm1 = vcmp.ne.s32.totalorder %v585_v12, 15  ;;  %v997_v50 = vor.u32 %v995_v45, %v993_v30  ;;  %v1001_v56 = vrot.slane %v999_v63, 1  ;;  %v1011_v31 = vshrl.u32 %v4274_v39, 16 }
  0x39   : > { %3527 = vmatprep.mubr.msk.bf16.mxu0 %vm4959_vm3, %v4279_v42  ;;  %3633 = vmatprep.mubr.msk.bf16.mxu1 %vm4959_vm3, %v4202_v3  ;;  %vm1144_vm0 = vmpackc.low %vm815_vm1, %vm815_vm1  ;;  %v599_v42 = vand.u32 15, %v401_v44  ;;  %v4331_v28 = vsel %vm4311_vm7, %v4299_v9, 0  ;;  %v1015_v43 = vshll.u32 %v4305_v23, 16  ;;  %v403_v29 = vadd.s32 232, %v3976_v5 }
  0x3a   : > { %5006 = vst [vmem:[#allocation12_spill] sm:$0xff] %v4331_v28  ;;  %v1176_v20 = vsel %vm1144_vm0, 65537, %v3915_v7  ;;  %v3164_v12 = vcombine.low %v3982_v8, %v1174_v53  ;;  %v1005_v6 = vor.u32 %v1003_v10, %v1001_v56  ;;  %v1009_v30 = vrot.slane %v1007_v38, 1 }
  0x3b   : > { %vm817_vm6 = vcmp.ne.s32.totalorder %v599_v42, 15  ;;  %v3165_v45 = vcombine.low %v3982_v8, %v1176_v20  ;;  %v613_v63 = vand.u32 15, %v403_v29  ;;  %v1019_v44 = vshrl.u32 %v4305_v23, 16  ;;  %v5096_v40 = vld [vmem:[#allocation11_spill] sm:$0xff] }
  0x3c   : > { %vm1146_vm1 = vmpackc.low %vm817_vm6, %vm817_vm6  ;;  %v1023_v57 = vshll.u32 %v4325_v2, 16  ;;  %v405_v60 = vadd.s32 248, %v3976_v5  ;;  %v4347_v42 = vsel %vm4961_vm4, %v997_v50, %v1001_v56  ;;  %v1017_v20 = vrot.slane %v1015_v43, 1 }
  0x3d   : > { %v1178_v55 = vsel %vm1146_vm1, 65537, %v3915_v7  ;;  %vm819_vm0 = vcmp.ne.s32.totalorder %v613_v63, 15  ;;  %vm4353_vm6 = vcmp.ne.s16.totalorder %v3164_v12, 0  ;;  %v5007_v29 = vmov 0 }
  0x3e   : > { %v5008_v29 = vsel %vm4353_vm6, 4294967295, %v5007_v29  ;;  %v4358_v5 = vsel %vm4961_vm4, %v1005_v6, %v1009_v30  ;;  %v1013_v10 = vor.u32 %v1011_v31, %v1009_v30  ;;  %vm1148_vm1 = vmpackc.low %vm819_vm0, %vm819_vm0  ;;  %v627_v38 = vand.u32 15, %v405_v60 }
  0x3f   : > { %vm4360_vm12 = vcmp.ne.s16.totalorder %v3165_v45, 0  ;;  %v5009_v56 = vmov 0  ;;  %v3166_v43 = vcombine.low %v3982_v8, %v1178_v55  ;;  %v1021_v53 = vor.u32 %v1019_v44, %v1017_v20 }
  0x40   : > { %3528 = vmatmul.mubr.msk.bf16.gmra.mrb[16].mxu0 %vm4959_vm3, %v4321_v49  ;;  %3634 = vmatmul.mubr.msk.bf16.gmra.mrb[20].mxu1 %vm4959_vm3, %v4228_v37  ;;  %v5010_v56 = vsel %vm4360_vm12, 4294967295, %v5009_v56  ;;  %v1025_v50 = vrot.slane %v1023_v57, 1  ;;  %v3152_v12 = vcombine.low %v4013_v19, %v4013_v19  ;;  %v1180_v63 = vsel %vm1148_vm1, 65537, %v3915_v7 }
  0x41   : > { %3531 = vmatprep.mubr.msk.bf16.mxu0 %vm4959_vm3, %v4331_v28  ;;  %3637 = vmatprep.mubr.msk.bf16.mxu1 %vm4959_vm3, %v4257_v14  ;;  %vm4368_vm3 = vcmp.ne.s32.totalorder %v627_v38, 15  ;;  %v4374_v60 = vcombine.low %v3915_v7, %v3915_v7  ;;  %v4379_v6 = vsel %vm4353_vm6, %v4347_v42, 0  ;;  %v1027_v55 = vshrl.u32 %v4325_v2, 16  ;;  %v5104_v58 = vld [vmem:[#allocation12_spill] sm:$0xff] }
  0x42   : > { %5013 = vst [vmem:[#allocation13_spill] sm:$0xff] %v4379_v6  ;;  %v4391_v31 = vsel %vm4360_vm12, %v4358_v5, 0  ;;  %v4394_v30 = vsel %vm4961_vm4, %v1013_v10, %v1017_v20  ;;  %vm1150_vm0 = vmpackc.low %vm4368_vm3, %vm4368_vm3  ;;  %vm4405_vm1 = vcmp.ne.s16.totalorder %v3166_v43, 0  ;;  %v5015_v38 = vmov 0 }
  0x43   : > { %5014 = vst [vmem:[#allocation14_spill] sm:$0xff] %v4391_v31  ;;  %v5016_v38 = vsel %vm4405_vm1, 4294967295, %v5015_v38  ;;  %v4410_v57 = vsel %vm4961_vm4, %v1021_v53, %v1025_v50  ;;  %v3167_v20 = vcombine.low %v3982_v8, %v1180_v63  ;;  %vm5017_vm3 = vcmask 31744  }
  0x44   : > { %vm5018_vm4 = vmmov %vm5017_vm3  ;;  %v1182_v63 = vsel %vm1150_vm0, 65537, %v3915_v7  ;;  %v1269_v7 = vshll.u32 %v4374_v60, 16  ;;  %v1048_v10 = vshll.u32 %v3152_v12, 16  ;;  %v1273_v43 = vshrl.u32 %v4374_v60, 16 }
  0x45   : > { %vm5019_vm7 = vmmov %vm5017_vm3  ;;  %vm4448_vm0 = vcmp.ne.s16.totalorder %v3167_v20, 0  ;;  %v1029_v44 = vor.u32 %v1027_v55, %v1025_v50  ;;  %v3168_v45 = vcombine.low %v3982_v8, %v1182_v63  ;;  %v4456_v19 = vsel %vm4405_vm1, %v4394_v30, 0 }
  0x46   : > { %v1271_v53 = vrot.slane %v1269_v7, 1  ;;  %v4464_v20 = vsel %vm4448_vm0, %v4410_v57, 0  ;;  %vm5024_vm1 = vcmask 31744   ;;  %v5070_v46 = vsel %vm4147_vm5, %v4163_v36, 0 }
  0x47   : > { %vm1246_vm6 = vcmp.ne.s16.totalorder %v3168_v45, 0  ;;  %vm5026_vm9 = vmmov %vm5024_vm1  ;;  %v5081_v1 = vsel %vm4209_vm15, %v4237_v18, 0  ;;  %v5089_v27 = vsel %vm4260_vm2, %v4271_v33, 0  ;;  %v4663_v18 = vld [vmem:[%s4944_s3] ss:$0 sm:$0xff] }
  0x48   : > { %3532 = vmatmul.mubr.msk.bf16.gmra.mrb[20].mxu0 %vm5017_vm3, %v4379_v6  ;;  %3638 = vmatmul.mubr.msk.bf16.gmra.mrb[24].mxu1 %vm5018_vm4, %v4274_v39  ;;  %vm1052_vm4 = vcmask 1047552   ;;  %v1275_v12 = vor.u32 %v1273_v43, %v1271_v53  ;;  %v1050_v6 = vrot.slane %v1048_v10, 1 }
  0x49   : > { %3535 = vmatprep.mubr.msk.bf16.mxu0 %vm5019_vm7, %v4391_v31  ;;  %3641 = vmatprep.mubr.msk.bf16.mxu1 %vm5017_vm3, %v4305_v23  ;;  %vm5022_vm7 = vsmask.f32 7424 }
  0x4a   : > { %v4459_v31 = vsel %vm5022_vm7, %v1029_v44, %v1271_v53  ;;  %vm5023_vm3 = vmmov %vm5022_vm7 }
  0x4b   : > { %vm1053_vm12 = vmand %vm1052_vm4, %vm5023_vm3  ;;  %v1294_v8 = vsel %vm4448_vm0, %v4459_v31, 0  ;;  %vm5028_vm3 = vcmask 1041408  }
  0x4c   : > { %v1279_v50 = vsel %vm1053_vm12, %v1275_v12, %v4042_v35  ;;  %vm5025_vm7 = vmmov %vm5024_vm1  ;;  %v1054_v10 = vsel %vm1053_vm12, %v1029_v44, %v1050_v6  ;;  %v2292_v35 = vsel %vm5028_vm3, %v4025_v24, 0 }
  0x4d   : > { %v4475_v55 = vsel %vm1246_vm6, %v1279_v50, 0  ;;  %vm5027_vm4 = vmmov %vm5024_vm1  ;;  %v4481_v43 = vsel %vm1246_vm6, %v1054_v10, 0 }
  0x4e   : > { %vm5029_vm0 = vmmov %vm5024_vm1 }
  0x4f   : > { %vm5033_vm12 = vmmov %vm5028_vm3 }
  0x50   : > { %3536 = vmatmul.mubr.msk.bf16.gmra.mrb[24].mxu0 %vm5024_vm1, %v4456_v19  ;;  %3642 = vmatmul.mubr.msk.bf16.gmra.mrb[28].mxu1 %vm5025_vm7, %v4325_v2  ;;  %vm5030_vm1 = vmmov %vm5029_vm0  ;;  %v1714_v6 = vsel %vm5033_vm12, %v4075_v54, 0  ;;  %v5075_v54 = vld [vmem:[#allocation6_spill] sm:$0xff] }
  0x51   : > { %3539 = vmatprep.mubr.msk.bf16.mxu0 %vm5026_vm9, %v4464_v20  ;;  %3647 = vmatprep.mubr.msk.bf16.mxu1 %vm5027_vm4, %v4020_v22  ;;  %vm5031_vm7 = vmmov %vm5029_vm0 }
  0x52   : > { %vm5032_vm9 = vmmov %vm5029_vm0 }
  0x53   : > { %vm5034_vm6 = vmmov %vm5029_vm0 }
  0x54   : > { %vm5035_vm4 = vmmov %vm5029_vm0 }
  0x55   : > { %vm5036_vm3 = vmmov %vm5029_vm0 }
  0x56   : > { %vm5040_vm12 = vmmov %vm5029_vm0 }
  0x57   : > { %vm5080_vm5 = vmmov %vm5029_vm0 }
  0x58   : > { %3540 = vmatmul.mubr.msk.bf16.gmra.mrb[28].mxu0 %vm5029_vm0, %v4481_v43  ;;  %3648 = vmatmul.mubr.msk.bf16.vlgmr.msra.gmra.mrb[0].mxu1 %vm5030_vm1, %v4028_v25  ;;  %vm5037_vm1 = vmmov %vm5029_vm0 }
  0x59   : > { %3545 = vmatprep.mubr.msk.bf16.mxu0 %vm5031_vm7, %v4017_v21  ;;  %3651 = vmatprep.mubr.msk.bf16.mxu1 %vm5032_vm9, %v4040_v32  ;;  %vm5038_vm7 = vmmov %vm5029_vm0  ;;  %v5057_v21 = vsel %vm4058_vm11, %v4066_v51, 0  ;;  %v5072_v51 = vld [vmem:[#allocation5_spill] sm:$0xff] }
  0x5a   : > { %3680 = vmatpush3.bf16.msra.mxu1 %v2292_v35  ;;  %vm5039_vm9 = vmmov %vm5029_vm0 }
  0x5b   : > { %vm5069_vm11 = vmmov %vm5029_vm0 }
  0x5c   : > { %vm5092_vm15 = vmmov %vm5029_vm0 }
  0x5d   : > { %vm5100_vm2 = vmmov %vm5029_vm0 }
  0x60   : > { %3546 = vmatmul.mubr.msk.bf16.vlgmr.msra.gmra.mrb[0].mxu0 %vm5034_vm6, %v4020_v22  ;;  %3652 = vmatmul.mubr.msk.bf16.gmra.mrb[4].mxu1 %vm5035_vm4, %v4051_v41  ;;  %vm5041_vm6 = vmmov %vm5029_vm0  ;;  %v5061_v22 = vld [vmem:[#allocation4_spill] sm:$0xff] }
  0x61   : > { %3578 = vmatpush3.bf16.msra.mxu0 %v1714_v6  ;;  %3549 = vmatprep.mubr.msk.bf16.mxu0 %vm5029_vm0, %v4028_v25  ;;  %vm5042_vm4 = vmmov %vm5029_vm0  ;;  %v5064_v25 = vld [vmem:[#allocation2_spill] sm:$0xff] }
  0x62   : > { %3655 = vmatprep.mubr.msk.bf16.mxu1 %vm5036_vm3, %v4091_v59  ;;  %vm5043_vm3 = vmmov %vm5029_vm0 }
  0x68   : > { %3550 = vmatmul.mubr.msk.bf16.gmra.mrb[4].mxu0 %vm5037_vm1, %v4040_v32  ;;  %3656 = vmatmul.mubr.msk.bf16.gmra.mrb[8].mxu1 %vm5038_vm7, %v4105_v0  ;;  %vm5044_vm1 = vmmov %vm5029_vm0  ;;  %v5066_v32 = vsel %vm4111_vm14, %v4143_v16, 0  ;;  %v5087_v16 = vld [vmem:[#allocation9_spill] sm:$0xff] }
  0x69   : > { %3553 = vmatprep.mubr.msk.bf16.mxu0 %vm5039_vm9, %v4051_v41  ;;  %3659 = vmatprep.mubr.msk.bf16.mxu1 %vm5040_vm12, %v4138_v15  ;;  %vm5045_vm7 = vmmov %vm5029_vm0  ;;  %v5068_v41 = vld [vmem:[#allocation3_spill] sm:$0xff] }
  0x6a   : > { %vm5046_vm9 = vmmov %vm5029_vm0 }
  0x6b   : > { %vm5047_vm12 = vmmov %vm5029_vm0 }
  0x6c   : > { %vm5076_vm14 = vmmov %vm5029_vm0 }
  0x70   : > { %3554 = vmatmul.mubr.msk.bf16.gmra.mrb[8].mxu0 %vm5041_vm6, %v4091_v59  ;;  %3660 = vmatmul.mubr.msk.bf16.gmra.mrb[12].mxu1 %vm5042_vm4, %v4160_v34  ;;  %vm5048_vm6 = vmmov %vm5029_vm0  ;;  %v5077_v59 = vsel %vm4195_vm13, %v4205_v4, 0  ;;  %v5109_v4 = vld [vmem:[#allocation13_spill] sm:$0xff] }
  0x71   : > { %3557 = vmatprep.mubr.msk.bf16.mxu0 %vm5029_vm0, %v4105_v0  ;;  %3663 = vmatprep.mubr.msk.bf16.mxu1 %vm5043_vm3, %v4184_v47  ;;  %vm5049_vm4 = vmmov %vm5029_vm0  ;;  %v5079_v0 = vld [vmem:[#allocation7_spill] sm:$0xff] }
  0x72   : > { %vm5050_vm3 = vmmov %vm5029_vm0 }
  0x73   : > { %vm5088_vm13 = vmmov %vm5029_vm0 }
  0x78   : > { %3558 = vmatmul.mubr.msk.bf16.gmra.mrb[12].mxu0 %vm5044_vm1, %v4138_v15  ;;  %3664 = vmatmul.mubr.msk.bf16.gmra.mrb[16].mxu1 %vm5045_vm7, %v4202_v3  ;;  %vm5051_vm1 = vmmov %vm5029_vm0  ;;  %v5085_v15 = vsel %vm4246_vm10, %v4253_v11, 0  ;;  %v4668_v11 = vld [vmem:[%s4945_s4] ss:$0 sm:$0xff] }
  0x79   : > { %3561 = vmatprep.mubr.msk.bf16.mxu0 %vm5046_vm9, %v4160_v34  ;;  %3667 = vmatprep.mubr.msk.bf16.mxu1 %vm5047_vm12, %v4228_v37  ;;  %vm5052_vm7 = vmmov %vm5029_vm0  ;;  %v5091_v34 = vld [vmem:[#allocation10_spill] sm:$0xff] }
  0x7a   : > { %vm5053_vm9 = vmmov %vm5029_vm0 }
  0x7b   : > { %vm5054_vm12 = vmmov %vm5029_vm0 }
  0x7c   : > { %vm5097_vm10 = vmmov %vm5029_vm0 }
  0x80   : > { %3562 = vmatmul.mubr.msk.bf16.gmra.mrb[16].mxu0 %vm5048_vm6, %v4184_v47  ;;  %3668 = vmatmul.mubr.msk.bf16.gmra.mrb[20].mxu1 %vm5049_vm4, %v4257_v14  ;;  %vm5055_vm6 = vmmov %vm5029_vm0 }
  0x81   : > { %3565 = vmatprep.mubr.msk.bf16.mxu0 %vm5029_vm0, %v4202_v3  ;;  %3671 = vmatprep.mubr.msk.bf16.mxu1 %vm5050_vm3, %v4274_v39  ;;  %vm5056_vm4 = vmmov %vm5029_vm0 }
  0x82   : > { %vm5058_vm3 = vmmov %vm5029_vm0 }
  0x88   : > { %3566 = vmatmul.mubr.msk.bf16.gmra.mrb[20].mxu0 %vm5051_vm1, %v4228_v37  ;;  %3672 = vmatmul.mubr.msk.bf16.gmra.mrb[24].mxu1 %vm5052_vm7, %v4305_v23  ;;  %vm5059_vm1 = vmmov %vm5029_vm0  ;;  %vm5060_vm7 = vnez %v4973_v52  ;;  %v5073_v52 = vsel %vm4167_vm8, %v4191_v48, 0  ;;  %v5114_v37 = vld [vmem:[#allocation14_spill] sm:$0xff] }
  0x89   : > { %3569 = vmatprep.mubr.msk.bf16.mxu0 %vm5053_vm9, %v4257_v14  ;;  %3675 = vmatprep.mubr.msk.bf16.mxu1 %vm5054_vm12, %v4325_v2  ;;  %v5062_v24 = vsel %vm5060_vm7, %v5061_v22, 0  ;;  %vm5063_vm9 = vmmov %vm5029_vm0 }
  0x8a   : > { %vm5065_vm12 = vmmov %vm5029_vm0 }
  0x8b   : > { %vm5082_vm7 = vmmov %vm5029_vm0 }
  0x8c   : > { %vm5084_vm8 = vmmov %vm5029_vm0 }
  0x90   : > { %3570 = vmatmul.mubr.msk.bf16.gmra.mrb[24].mxu0 %vm5055_vm6, %v4274_v39  ;;  %3676 = vmatmul.mubr.msk.bf16.gmra.mrb[28].mxu1 %vm5056_vm4, %v4374_v60  ;;  %vm5067_vm6 = vmmov %vm5029_vm0 }
  0x91   : > { %3573 = vmatprep.mubr.msk.bf16.mxu0 %vm5029_vm0, %v4305_v23  ;;  %3681 = vmatprep.mubr.msk.bf16.mxu1 %vm5058_vm3, %v5057_v21  ;;  %vm5071_vm4 = vmmov %vm5029_vm0 }
  0x92   : > { %vm5074_vm3 = vmmov %vm5029_vm0 }
  0x98   : > { %3574 = vmatmul.mubr.msk.bf16.gmra.mrb[28].mxu0 %vm5059_vm1, %v4325_v2  ;;  %3682 = vmatmul.mubr.msk.bf16.vlgmr.msra.gmra.mrb[0].mxu1 %vm5063_vm9, %v5062_v24  ;;  %vm5078_vm1 = vmmov %vm5029_vm0  ;;  %v5083_v2 = vld [vmem:[#allocation8_spill] sm:$0xff] }
  0x99   : > { %3579 = vmatprep.mubr.msk.bf16.mxu0 %vm5065_vm12, %v5064_v25  ;;  %3685 = vmatprep.mubr.msk.bf16.mxu1 %vm5067_vm6, %v5066_v32  ;;  %vm5086_vm9 = vmmov %vm5029_vm0  ;;  %vm5093_vm6 = vnez %v5001_v62 }
  0x9a   : > { %vm5090_vm12 = vmmov %vm5029_vm0  ;;  %v5094_v36 = vsel %vm5093_vm6, %v4299_v9, 0 }
  0x9b   : > { %vm5117_vm6 = vmmov %vm5029_vm0 }
  0xa0   : > { %3580 = vmatmul.mubr.msk.bf16.vlgmr.msra.gmra.mrb[32].mxu0 %vm5069_vm11, %v5068_v41  ;;  %3686 = vmatmul.mubr.msk.bf16.gmra.mrb[4].mxu1 %vm5071_vm4, %v5070_v46  ;;  %vm5095_vm11 = vmmov %vm5029_vm0  ;;  %vm5098_vm4 = vnez %v5005_v17 }
  0xa1   : > { %3583 = vmatprep.mubr.msk.bf16.mxu0 %vm5029_vm0, %v5072_v51  ;;  %3689 = vmatprep.mubr.msk.bf16.mxu1 %vm5074_vm3, %v5073_v52  ;;  %v5099_v47 = vsel %vm5098_vm4, %v4347_v42, 0  ;;  %vm5101_vm3 = vnez %v5008_v29  ;;  %vm5120_vm4 = vmmov %vm5029_vm0 }
  0xa2   : > { %v5102_v48 = vsel %vm5101_vm3, %v4358_v5, 0 }
  0xa8   : > { %3584 = vmatmul.mubr.msk.bf16.gmra.mrb[36].mxu0 %vm5076_vm14, %v5075_v54  ;;  %3690 = vmatmul.mubr.msk.bf16.gmra.mrb[8].mxu1 %vm5078_vm1, %v5077_v59  ;;  %vm5103_vm14 = vmmov %vm5029_vm0 }
  0xa9   : > { %3587 = vmatprep.mubr.msk.bf16.mxu0 %vm5080_vm5, %v5079_v0  ;;  %3693 = vmatprep.mubr.msk.bf16.mxu1 %vm5082_vm7, %v5081_v1  ;;  %vm5105_vm1 = vmmov %vm5029_vm0  ;;  %vm5106_vm5 = vnez %v5010_v56 }
  0xaa   : > { %v5107_v3 = vsel %vm5106_vm5, %v4394_v30, 0  ;;  %vm5108_vm7 = vmmov %vm5029_vm0 }
  0xb0   : > { %3588 = vmatmul.mubr.msk.bf16.gmra.mrb[40].mxu0 %vm5084_vm8, %v5083_v2  ;;  %3694 = vmatmul.mubr.msk.bf16.gmra.mrb[12].mxu1 %vm5086_vm9, %v5085_v15  ;;  %vm5110_vm8 = vmmov %vm5029_vm0  ;;  %vm5111_vm9 = vnez %v5016_v38 }
  0xb1   : > { %3591 = vmatprep.mubr.msk.bf16.mxu0 %vm5088_vm13, %v5087_v16  ;;  %3697 = vmatprep.mubr.msk.bf16.mxu1 %vm5090_vm12, %v5089_v27  ;;  %v5112_v13 = vsel %vm5111_vm9, %v4410_v57, 0  ;;  %vm5113_vm13 = vmmov %vm5029_vm0 }
  0xb2   : > { %vm5115_vm12 = vmmov %vm5029_vm0 }
  0xb8   : > { %3592 = vmatmul.mubr.msk.bf16.gmra.mrb[44].mxu0 %vm5092_vm15, %v5091_v34  ;;  %3698 = vmatmul.mubr.msk.bf16.gmra.mrb[16].mxu1 %vm5095_vm11, %v5094_v36  ;;  %vm5118_vm11 = vmmov %vm5029_vm0 }
  0xb9   : > { %3595 = vmatprep.mubr.msk.bf16.mxu0 %vm5097_vm10, %v5096_v40  ;;  %3701 = vmatprep.mubr.msk.bf16.mxu1 %vm5029_vm0, %v5099_v47  ;;  %vm5119_vm10 = vmmov %vm5029_vm0 }
  0xc0   : > { %3596 = vmatmul.mubr.msk.bf16.gmra.mrb[48].mxu0 %vm5100_vm2, %v4321_v49  ;;  %3702 = vmatmul.mubr.msk.bf16.gmra.mrb[20].mxu1 %vm5103_vm14, %v5102_v48  ;;  %vm2949_vm2 = vcmask 125952  }
  0xc1   : > { %3599 = vmatprep.mubr.msk.bf16.mxu0 %vm5105_vm1, %v5104_v58  ;;  %3705 = vmatprep.mubr.msk.bf16.mxu1 %vm5108_vm7, %v5107_v3 }
  0xc8   : > { %3600 = vmatmul.mubr.msk.bf16.gmra.mrb[52].mxu0 %vm5110_vm8, %v5109_v4  ;;  %3706 = vmatmul.mubr.msk.bf16.gmra.mrb[24].mxu1 %vm5113_vm13, %v5112_v13 }
  0xc9   : > { %3603 = vmatprep.mubr.msk.bf16.mxu0 %vm5115_vm12, %v5114_v37  ;;  %3709 = vmatprep.mubr.msk.bf16.mxu1 %vm5117_vm6, %v1294_v8 }
  0xd0   : > { %3604 = vmatmul.mubr.msk.bf16.gmra.mrb[56].mxu0 %vm5118_vm11, %v4456_v19  ;;  %3710 = vmatmul.mubr.msk.bf16.gmra.mrb[28].mxu1 %vm5119_vm10, %v4475_v55 }
  0xd1   : > { %3607 = vmatprep.mubr.msk.bf16.mxu0 %vm5120_vm4, %v4464_v20 }
  0xd8   : > { %3608 = vmatmul.mubr.msk.bf16.gmra.mrb[60].mxu0 %vm5029_vm0, %v4481_v43 }
 0x133   : > { %v3547_v61 = vpop.f32.mrb[0].mxu0 }
 0x134   : > { %v2497_v14 = vmul.f32 %v3547_v61, %v4663_v18  ;;  %v1582_v26 = vpop.f32.mrb[1].mxu0 }
 0x135   : > { %v2495_v33 = vmul.f32 %v4663_v18, %v1582_v26  ;;  %v3548_v39 = vpop.f32.mrb[2].mxu0 }
 0x136   : > { %v2535_v62 = vadd.f32 %v4668_v11, %v2497_v14  ;;  %v2498_v9 = vmul.f32 %v3548_v39, %v4663_v18  ;;  %v1585_v23 = vpop.f32.mrb[3].mxu0 }
 0x137   : > { %v2533_v17 = vadd.f32 %v4668_v11, %v2495_v33  ;;  %v2496_v49 = vmul.f32 %v4663_v18, %v1585_v23 }
 0x138   : > { %v2567_v42 = vmax.f32 %v2535_v62, 0.0  ;;  %v2536_v29 = vadd.f32 %v4668_v11, %v2498_v9 }
 0x139   : > { %v2565_v5 = vmax.f32 %v2533_v17, 0.0  ;;  %v2534_v56 = vadd.f32 %v4668_v11, %v2496_v49 }
 0x13a   : > { %v3347_v60 = vpack.c.bf16 %v2567_v42, %v2567_v42  ;;  %v2568_v19 = vmax.f32 %v2536_v29, 0.0 }
 0x13b   : > { %v3343_v57 = vpack.c.bf16 %v2565_v5, %v2565_v5  ;;  %v2566_v31 = vmax.f32 %v2534_v56, 0.0  ;;  %v3551_v30 = vpop.f32.mrb[4].mxu0 }
 0x13c   : > { %2954 = vst.msk [vmem:[%s4681_s22 + $0x10] sm:$0xf] %vm2949_vm2, %v3347_v60  ;;  %v3348_v45 = vpack.c.bf16 %v2568_v19, %v2568_v19  ;;  %v2501_v44 = vmul.f32 %v3551_v30, %v4663_v18  ;;  %v1598_v38 = vpop.f32.mrb[5].mxu0 }
 0x13d   : > { %2950 = vst.msk [vmem:[%s4681_s22] sm:$0xf] %vm2949_vm2, %v3343_v57  ;;  %v3344_v28 = vpack.c.bf16 %v2566_v31, %v2566_v31  ;;  %v2499_v53 = vmul.f32 %v4663_v18, %v1598_v38  ;;  %v3552_v63 = vpop.f32.mrb[6].mxu0 }
 0x13e   : > { %2955 = vst.msk [vmem:[%s4681_s22 + $0x14] sm:$0xf] %vm2949_vm2, %v3348_v45  ;;  %v2539_v7 = vadd.f32 %v4668_v11, %v2501_v44  ;;  %v2502_v12 = vmul.f32 %v3552_v63, %v4663_v18  ;;  %v1601_v20 = vpop.f32.mrb[7].mxu0 }
 0x13f   : > { %2951 = vst.msk [vmem:[%s4681_s22 + $0x4] sm:$0xf] %vm2949_vm2, %v3344_v28  ;;  %v2537_v8 = vadd.f32 %v4668_v11, %v2499_v53  ;;  %v2500_v50 = vmul.f32 %v4663_v18, %v1601_v20 }
 0x140   : > { %v2571_v55 = vmax.f32 %v2539_v7, 0.0  ;;  %v2540_v10 = vadd.f32 %v4668_v11, %v2502_v12 }
 0x141   : > { %v2569_v43 = vmax.f32 %v2537_v8, 0.0  ;;  %v2538_v35 = vadd.f32 %v4668_v11, %v2500_v50 }
 0x142   : > { %v3355_v6 = vpack.c.bf16 %v2571_v55, %v2571_v55  ;;  %v2572_v21 = vmax.f32 %v2540_v10, 0.0 }
 0x143   : > { %v3351_v22 = vpack.c.bf16 %v2569_v43, %v2569_v43  ;;  %v2570_v24 = vmax.f32 %v2538_v35, 0.0  ;;  %v3555_v25 = vpop.f32.mrb[8].mxu0 }
 0x144   : > { %2962 = vst.msk [vmem:[%s4681_s22 + $0x30] sm:$0xf] %vm2949_vm2, %v3355_v6  ;;  %v3356_v32 = vpack.c.bf16 %v2572_v21, %v2572_v21  ;;  %v2505_v41 = vmul.f32 %v3555_v25, %v4663_v18  ;;  %v1614_v46 = vpop.f32.mrb[9].mxu0 }
 0x145   : > { %2958 = vst.msk [vmem:[%s4681_s22 + $0x20] sm:$0xf] %vm2949_vm2, %v3351_v22  ;;  %v3352_v51 = vpack.c.bf16 %v2570_v24, %v2570_v24  ;;  %v2503_v52 = vmul.f32 %v4663_v18, %v1614_v46  ;;  %v3556_v54 = vpop.f32.mrb[10].mxu0 }
 0x146   : > { %2963 = vst.msk [vmem:[%s4681_s22 + $0x34] sm:$0xf] %vm2949_vm2, %v3356_v32  ;;  %v2543_v59 = vadd.f32 %v4668_v11, %v2505_v41  ;;  %v2506_v0 = vmul.f32 %v3556_v54, %v4663_v18  ;;  %v1617_v1 = vpop.f32.mrb[11].mxu0 }
 0x147   : > { %2959 = vst.msk [vmem:[%s4681_s22 + $0x24] sm:$0xf] %vm2949_vm2, %v3352_v51  ;;  %v2541_v2 = vadd.f32 %v4668_v11, %v2503_v52  ;;  %v2504_v15 = vmul.f32 %v4663_v18, %v1617_v1 }
 0x148   : > { %v2575_v16 = vmax.f32 %v2543_v59, 0.0  ;;  %v2544_v27 = vadd.f32 %v4668_v11, %v2506_v0 }
 0x149   : > { %v2573_v34 = vmax.f32 %v2541_v2, 0.0  ;;  %v2542_v36 = vadd.f32 %v4668_v11, %v2504_v15 }
 0x14a   : > { %v3363_v40 = vpack.c.bf16 %v2575_v16, %v2575_v16  ;;  %v2576_v47 = vmax.f32 %v2544_v27, 0.0 }
 0x14b   : > { %v3359_v48 = vpack.c.bf16 %v2573_v34, %v2573_v34  ;;  %v2574_v58 = vmax.f32 %v2542_v36, 0.0  ;;  %v3559_v3 = vpop.f32.mrb[12].mxu0 }
 0x14c   : > { %2970 = vst.msk [vmem:[%s4681_s22 + $0x50] sm:$0xf] %vm2949_vm2, %v3363_v40  ;;  %v3364_v4 = vpack.c.bf16 %v2576_v47, %v2576_v47  ;;  %v2509_v13 = vmul.f32 %v3559_v3, %v4663_v18  ;;  %v1630_v37 = vpop.f32.mrb[13].mxu0 }
 0x14d   : > { %2966 = vst.msk [vmem:[%s4681_s22 + $0x40] sm:$0xf] %vm2949_vm2, %v3359_v48  ;;  %v3360_v61 = vpack.c.bf16 %v2574_v58, %v2574_v58  ;;  %v2507_v14 = vmul.f32 %v4663_v18, %v1630_v37  ;;  %v3560_v26 = vpop.f32.mrb[14].mxu0 }
 0x14e   : > { %2971 = vst.msk [vmem:[%s4681_s22 + $0x54] sm:$0xf] %vm2949_vm2, %v3364_v4  ;;  %v2547_v33 = vadd.f32 %v4668_v11, %v2509_v13  ;;  %v2510_v39 = vmul.f32 %v3560_v26, %v4663_v18  ;;  %v1633_v62 = vpop.f32.mrb[15].mxu0 }
 0x14f   : > { %2967 = vst.msk [vmem:[%s4681_s22 + $0x44] sm:$0xf] %vm2949_vm2, %v3360_v61  ;;  %v2545_v9 = vadd.f32 %v4668_v11, %v2507_v14  ;;  %v2508_v23 = vmul.f32 %v4663_v18, %v1633_v62 }
 0x150   : > { %v2579_v17 = vmax.f32 %v2547_v33, 0.0  ;;  %v2548_v49 = vadd.f32 %v4668_v11, %v2510_v39 }
 0x151   : > { %v2577_v42 = vmax.f32 %v2545_v9, 0.0  ;;  %v2546_v29 = vadd.f32 %v4668_v11, %v2508_v23 }
 0x152   : > { %v3371_v5 = vpack.c.bf16 %v2579_v17, %v2579_v17  ;;  %v2580_v56 = vmax.f32 %v2548_v49, 0.0 }
 0x153   : > { %v3367_v60 = vpack.c.bf16 %v2577_v42, %v2577_v42  ;;  %v2578_v19 = vmax.f32 %v2546_v29, 0.0  ;;  %v3563_v57 = vpop.f32.mrb[16].mxu0 }
 0x154   : > { %2978 = vst.msk [vmem:[%s4681_s22 + $0x70] sm:$0xf] %vm2949_vm2, %v3371_v5  ;;  %v3372_v31 = vpack.c.bf16 %v2580_v56, %v2580_v56  ;;  %v2513_v30 = vmul.f32 %v3563_v57, %v4663_v18  ;;  %v1646_v45 = vpop.f32.mrb[17].mxu0 }
 0x155   : > { %2974 = vst.msk [vmem:[%s4681_s22 + $0x60] sm:$0xf] %vm2949_vm2, %v3367_v60  ;;  %v3368_v44 = vpack.c.bf16 %v2578_v19, %v2578_v19  ;;  %v2511_v38 = vmul.f32 %v4663_v18, %v1646_v45  ;;  %v3564_v28 = vpop.f32.mrb[18].mxu0 }
 0x156   : > { %2979 = vst.msk [vmem:[%s4681_s22 + $0x74] sm:$0xf] %vm2949_vm2, %v3372_v31  ;;  %v2551_v53 = vadd.f32 %v4668_v11, %v2513_v30  ;;  %v2514_v63 = vmul.f32 %v3564_v28, %v4663_v18  ;;  %v1649_v7 = vpop.f32.mrb[19].mxu0 }
 0x157   : > { %2975 = vst.msk [vmem:[%s4681_s22 + $0x64] sm:$0xf] %vm2949_vm2, %v3368_v44  ;;  %v2549_v12 = vadd.f32 %v4668_v11, %v2511_v38  ;;  %v2512_v20 = vmul.f32 %v4663_v18, %v1649_v7 }
 0x158   : > { %v2583_v8 = vmax.f32 %v2551_v53, 0.0  ;;  %v2552_v50 = vadd.f32 %v4668_v11, %v2514_v63 }
 0x159   : > { %v2581_v55 = vmax.f32 %v2549_v12, 0.0  ;;  %v2550_v10 = vadd.f32 %v4668_v11, %v2512_v20 }
 0x15a   : > { %v3379_v43 = vpack.c.bf16 %v2583_v8, %v2583_v8  ;;  %v2584_v35 = vmax.f32 %v2552_v50, 0.0 }
 0x15b   : > { %v3375_v6 = vpack.c.bf16 %v2581_v55, %v2581_v55  ;;  %v2582_v21 = vmax.f32 %v2550_v10, 0.0  ;;  %v3567_v22 = vpop.f32.mrb[20].mxu0 }
 0x15c   : > { %2986 = vst.msk [vmem:[%s4681_s22 + $0x90] sm:$0xf] %vm2949_vm2, %v3379_v43  ;;  %v3380_v24 = vpack.c.bf16 %v2584_v35, %v2584_v35  ;;  %v2517_v25 = vmul.f32 %v3567_v22, %v4663_v18  ;;  %v1662_v32 = vpop.f32.mrb[21].mxu0 }
 0x15d   : > { %2982 = vst.msk [vmem:[%s4681_s22 + $0x80] sm:$0xf] %vm2949_vm2, %v3375_v6  ;;  %v3376_v41 = vpack.c.bf16 %v2582_v21, %v2582_v21  ;;  %v2515_v46 = vmul.f32 %v4663_v18, %v1662_v32  ;;  %v3568_v51 = vpop.f32.mrb[22].mxu0 }
 0x15e   : > { %2987 = vst.msk [vmem:[%s4681_s22 + $0x94] sm:$0xf] %vm2949_vm2, %v3380_v24  ;;  %v2555_v52 = vadd.f32 %v4668_v11, %v2517_v25  ;;  %v2518_v54 = vmul.f32 %v3568_v51, %v4663_v18  ;;  %v1665_v59 = vpop.f32.mrb[23].mxu0 }
 0x15f   : > { %2983 = vst.msk [vmem:[%s4681_s22 + $0x84] sm:$0xf] %vm2949_vm2, %v3376_v41  ;;  %v2553_v0 = vadd.f32 %v4668_v11, %v2515_v46  ;;  %v2516_v1 = vmul.f32 %v4663_v18, %v1665_v59 }
 0x160   : > { %v2587_v2 = vmax.f32 %v2555_v52, 0.0  ;;  %v2556_v15 = vadd.f32 %v4668_v11, %v2518_v54 }
 0x161   : > { %v2585_v16 = vmax.f32 %v2553_v0, 0.0  ;;  %v2554_v27 = vadd.f32 %v4668_v11, %v2516_v1 }
 0x162   : > { %v3387_v34 = vpack.c.bf16 %v2587_v2, %v2587_v2  ;;  %v2588_v36 = vmax.f32 %v2556_v15, 0.0 }
 0x163   : > { %v3383_v40 = vpack.c.bf16 %v2585_v16, %v2585_v16  ;;  %v2586_v47 = vmax.f32 %v2554_v27, 0.0  ;;  %v3571_v48 = vpop.f32.mrb[24].mxu0 }
 0x164   : > { %2994 = vst.msk [vmem:[%s4681_s22 + $0xb0] sm:$0xf] %vm2949_vm2, %v3387_v34  ;;  %v3388_v58 = vpack.c.bf16 %v2588_v36, %v2588_v36  ;;  %v2521_v3 = vmul.f32 %v3571_v48, %v4663_v18  ;;  %v1678_v4 = vpop.f32.mrb[25].mxu0 }
 0x165   : > { %2990 = vst.msk [vmem:[%s4681_s22 + $0xa0] sm:$0xf] %vm2949_vm2, %v3383_v40  ;;  %v3384_v13 = vpack.c.bf16 %v2586_v47, %v2586_v47  ;;  %v2519_v37 = vmul.f32 %v4663_v18, %v1678_v4  ;;  %v3572_v61 = vpop.f32.mrb[26].mxu0 }
 0x166   : > { %2995 = vst.msk [vmem:[%s4681_s22 + $0xb4] sm:$0xf] %vm2949_vm2, %v3388_v58  ;;  %v2559_v14 = vadd.f32 %v4668_v11, %v2521_v3  ;;  %v2522_v26 = vmul.f32 %v3572_v61, %v4663_v18  ;;  %v1681_v33 = vpop.f32.mrb[27].mxu0 }
 0x167   : > { %2991 = vst.msk [vmem:[%s4681_s22 + $0xa4] sm:$0xf] %vm2949_vm2, %v3384_v13  ;;  %v2557_v39 = vadd.f32 %v4668_v11, %v2519_v37  ;;  %v2520_v62 = vmul.f32 %v4663_v18, %v1681_v33 }
 0x168   : > { %v2591_v9 = vmax.f32 %v2559_v14, 0.0  ;;  %v2560_v23 = vadd.f32 %v4668_v11, %v2522_v26 }
 0x169   : > { %v2589_v17 = vmax.f32 %v2557_v39, 0.0  ;;  %v2558_v49 = vadd.f32 %v4668_v11, %v2520_v62 }
 0x16a   : > { %v3395_v42 = vpack.c.bf16 %v2591_v9, %v2591_v9  ;;  %v2592_v29 = vmax.f32 %v2560_v23, 0.0 }
 0x16b   : > { %v3391_v5 = vpack.c.bf16 %v2589_v17, %v2589_v17  ;;  %v2590_v56 = vmax.f32 %v2558_v49, 0.0  ;;  %v3575_v60 = vpop.f32.mrb[28].mxu0  ;;  %v3683_v19 = vpop.f32.mrb[0].mxu1 }
 0x16c   : > { %3002 = vst.msk [vmem:[%s4681_s22 + $0xd0] sm:$0xf] %vm2949_vm2, %v3395_v42  ;;  %v3396_v57 = vpack.c.bf16 %v2592_v29, %v2592_v29  ;;  %v2525_v31 = vmul.f32 %v3575_v60, %v4663_v18  ;;  %v1694_v30 = vpop.f32.mrb[29].mxu0  ;;  %v2328_v45 = vpop.f32.mrb[1].mxu1 }
 0x16d   : > { %2998 = vst.msk [vmem:[%s4681_s22 + $0xc0] sm:$0xf] %vm2949_vm2, %v3391_v5  ;;  %v3392_v44 = vpack.c.bf16 %v2590_v56, %v2590_v56  ;;  %v2523_v38 = vmul.f32 %v4663_v18, %v1694_v30  ;;  %v3576_v28 = vpop.f32.mrb[30].mxu0  ;;  %v3684_v53 = vpop.f32.mrb[2].mxu1 }
 0x16e   : > { %3003 = vst.msk [vmem:[%s4681_s22 + $0xd4] sm:$0xf] %vm2949_vm2, %v3396_v57  ;;  %v2563_v63 = vadd.f32 %v4668_v11, %v2525_v31  ;;  %v2526_v7 = vmul.f32 %v3576_v28, %v4663_v18  ;;  %v1697_v12 = vpop.f32.mrb[31].mxu0  ;;  %v2331_v20 = vpop.f32.mrb[3].mxu1 }
 0x16f   : > { %2999 = vst.msk [vmem:[%s4681_s22 + $0xc4] sm:$0xf] %vm2949_vm2, %v3392_v44  ;;  %v2561_v8 = vadd.f32 %v4668_v11, %v2523_v38  ;;  %v2524_v50 = vmul.f32 %v4663_v18, %v1697_v12 }
 0x170   : > { %v2595_v55 = vmax.f32 %v2563_v63, 0.0  ;;  %v2564_v10 = vadd.f32 %v4668_v11, %v2526_v7 }
 0x171   : > { %v2593_v43 = vmax.f32 %v2561_v8, 0.0  ;;  %v2562_v35 = vadd.f32 %v4668_v11, %v2524_v50 }
 0x172   : > { %v3403_v6 = vpack.c.bf16 %v2595_v55, %v2595_v55  ;;  %v2596_v21 = vmax.f32 %v2564_v10, 0.0 }
 0x173   : > { %v3399_v22 = vpack.c.bf16 %v2593_v43, %v2593_v43  ;;  %v2594_v24 = vmax.f32 %v2562_v35, 0.0  ;;  %v3581_v25 = vpop.f32.mrb[32].mxu0  ;;  %v3687_v32 = vpop.f32.mrb[4].mxu1 }
 0x174   : > { %3010 = vst.msk [vmem:[%s4681_s22 + $0xf0] sm:$0xf] %vm2949_vm2, %v3403_v6  ;;  %v3404_v41 = vpack.c.bf16 %v2596_v21, %v2596_v21  ;;  %v3713_v46 = vadd.f32 %v3683_v19, %v3581_v25  ;;  %v1750_v51 = vpop.f32.mrb[33].mxu0  ;;  %v2344_v52 = vpop.f32.mrb[5].mxu1 }
 0x175   : > { %3006 = vst.msk [vmem:[%s4681_s22 + $0xe0] sm:$0xf] %vm2949_vm2, %v3399_v22  ;;  %v3400_v54 = vpack.c.bf16 %v2594_v24, %v2594_v24  ;;  %v3714_v59 = vadd.f32 %v2328_v45, %v1750_v51  ;;  %v3582_v0 = vpop.f32.mrb[34].mxu0  ;;  %v3688_v1 = vpop.f32.mrb[6].mxu1 }
 0x176   : > { %3011 = vst.msk [vmem:[%s4681_s22 + $0xf4] sm:$0xf] %vm2949_vm2, %v3404_v41  ;;  %v2599_v2 = vmul.f32 %v3713_v46, %v4663_v18  ;;  %v3715_v15 = vadd.f32 %v3684_v53, %v3582_v0  ;;  %v1753_v16 = vpop.f32.mrb[35].mxu0  ;;  %v2347_v27 = vpop.f32.mrb[7].mxu1 }
 0x177   : > { %3007 = vst.msk [vmem:[%s4681_s22 + $0xe4] sm:$0xf] %vm2949_vm2, %v3400_v54  ;;  %v2597_v34 = vmul.f32 %v3714_v59, %v4663_v18  ;;  %v3716_v36 = vadd.f32 %v2331_v20, %v1753_v16 }
 0x178   : > { %v2631_v40 = vadd.f32 %v4668_v11, %v2599_v2  ;;  %v2600_v47 = vmul.f32 %v3715_v15, %v4663_v18 }
 0x179   : > { %v2629_v48 = vadd.f32 %v4668_v11, %v2597_v34  ;;  %v2598_v58 = vmul.f32 %v3716_v36, %v4663_v18 }
 0x17a   : > { %v2663_v3 = vmax.f32 %v2631_v40, 0.0  ;;  %v2632_v4 = vadd.f32 %v4668_v11, %v2600_v47 }
 0x17b   : > { %v2661_v13 = vmax.f32 %v2629_v48, 0.0  ;;  %v2630_v37 = vadd.f32 %v4668_v11, %v2598_v58  ;;  %v3585_v61 = vpop.f32.mrb[36].mxu0  ;;  %v3691_v14 = vpop.f32.mrb[8].mxu1 }
 0x17c   : > { %v3349_v26 = vpack.c.bf16 %v2663_v3, %v2663_v3  ;;  %v2664_v33 = vmax.f32 %v2632_v4, 0.0  ;;  %v3717_v39 = vadd.f32 %v3687_v32, %v3585_v61  ;;  %v1766_v62 = vpop.f32.mrb[37].mxu0  ;;  %v2360_v9 = vpop.f32.mrb[9].mxu1 }
 0x17d   : > { %v3345_v23 = vpack.c.bf16 %v2661_v13, %v2661_v13  ;;  %v2662_v17 = vmax.f32 %v2630_v37, 0.0  ;;  %v3718_v49 = vadd.f32 %v2344_v52, %v1766_v62  ;;  %v3586_v42 = vpop.f32.mrb[38].mxu0  ;;  %v3692_v29 = vpop.f32.mrb[10].mxu1 }
 0x17e   : > { %2956 = vst.msk [vmem:[%s4681_s22 + $0x18] sm:$0xf] %vm2949_vm2, %v3349_v26  ;;  %v3350_v5 = vpack.c.bf16 %v2664_v33, %v2664_v33  ;;  %v2603_v56 = vmul.f32 %v3717_v39, %v4663_v18  ;;  %v3719_v60 = vadd.f32 %v3688_v1, %v3586_v42  ;;  %v1769_v19 = vpop.f32.mrb[39].mxu0  ;;  %v2363_v57 = vpop.f32.mrb[11].mxu1 }
 0x17f   : > { %2952 = vst.msk [vmem:[%s4681_s22 + $0x8] sm:$0xf] %vm2949_vm2, %v3345_v23  ;;  %v3346_v31 = vpack.c.bf16 %v2662_v17, %v2662_v17  ;;  %v2601_v30 = vmul.f32 %v3718_v49, %v4663_v18  ;;  %v3720_v45 = vadd.f32 %v2347_v27, %v1769_v19 }
 0x180   : > { %2957 = vst.msk [vmem:[%s4681_s22 + $0x1c] sm:$0xf] %vm2949_vm2, %v3350_v5  ;;  %v2635_v44 = vadd.f32 %v4668_v11, %v2603_v56  ;;  %v2604_v38 = vmul.f32 %v3719_v60, %v4663_v18 }
 0x181   : > { %2953 = vst.msk [vmem:[%s4681_s22 + $0xc] sm:$0xf] %vm2949_vm2, %v3346_v31  ;;  %v2633_v28 = vadd.f32 %v4668_v11, %v2601_v30  ;;  %v2602_v53 = vmul.f32 %v3720_v45, %v4663_v18 }
 0x182   : > { %v2667_v63 = vmax.f32 %v2635_v44, 0.0  ;;  %v2636_v7 = vadd.f32 %v4668_v11, %v2604_v38 }
 0x183   : > { %v2665_v12 = vmax.f32 %v2633_v28, 0.0  ;;  %v2634_v20 = vadd.f32 %v4668_v11, %v2602_v53  ;;  %v3589_v8 = vpop.f32.mrb[40].mxu0  ;;  %v3695_v50 = vpop.f32.mrb[12].mxu1 }
 0x184   : > { %v3357_v55 = vpack.c.bf16 %v2667_v63, %v2667_v63  ;;  %v2668_v10 = vmax.f32 %v2636_v7, 0.0  ;;  %v3721_v43 = vadd.f32 %v3691_v14, %v3589_v8  ;;  %v1782_v35 = vpop.f32.mrb[41].mxu0  ;;  %v2376_v6 = vpop.f32.mrb[13].mxu1 }
 0x185   : > { %v3353_v21 = vpack.c.bf16 %v2665_v12, %v2665_v12  ;;  %v2666_v22 = vmax.f32 %v2634_v20, 0.0  ;;  %v3722_v24 = vadd.f32 %v2360_v9, %v1782_v35  ;;  %v3590_v25 = vpop.f32.mrb[42].mxu0  ;;  %v3696_v32 = vpop.f32.mrb[14].mxu1 }
 0x186   : > { %2964 = vst.msk [vmem:[%s4681_s22 + $0x38] sm:$0xf] %vm2949_vm2, %v3357_v55  ;;  %v3358_v41 = vpack.c.bf16 %v2668_v10, %v2668_v10  ;;  %v2607_v46 = vmul.f32 %v3721_v43, %v4663_v18  ;;  %v3723_v51 = vadd.f32 %v3692_v29, %v3590_v25  ;;  %v1785_v52 = vpop.f32.mrb[43].mxu0  ;;  %v2379_v54 = vpop.f32.mrb[15].mxu1 }
 0x187   : > { %2960 = vst.msk [vmem:[%s4681_s22 + $0x28] sm:$0xf] %vm2949_vm2, %v3353_v21  ;;  %v3354_v59 = vpack.c.bf16 %v2666_v22, %v2666_v22  ;;  %v2605_v0 = vmul.f32 %v3722_v24, %v4663_v18  ;;  %v3724_v1 = vadd.f32 %v2363_v57, %v1785_v52 }
 0x188   : > { %2965 = vst.msk [vmem:[%s4681_s22 + $0x3c] sm:$0xf] %vm2949_vm2, %v3358_v41  ;;  %v2639_v2 = vadd.f32 %v4668_v11, %v2607_v46  ;;  %v2608_v15 = vmul.f32 %v3723_v51, %v4663_v18 }
 0x189   : > { %2961 = vst.msk [vmem:[%s4681_s22 + $0x2c] sm:$0xf] %vm2949_vm2, %v3354_v59  ;;  %v2637_v16 = vadd.f32 %v4668_v11, %v2605_v0  ;;  %v2606_v27 = vmul.f32 %v3724_v1, %v4663_v18 }
 0x18a   : > { %v2671_v34 = vmax.f32 %v2639_v2, 0.0  ;;  %v2640_v36 = vadd.f32 %v4668_v11, %v2608_v15 }
 0x18b   : > { %v2669_v40 = vmax.f32 %v2637_v16, 0.0  ;;  %v2638_v47 = vadd.f32 %v4668_v11, %v2606_v27  ;;  %v3593_v48 = vpop.f32.mrb[44].mxu0  ;;  %v3699_v58 = vpop.f32.mrb[16].mxu1 }
 0x18c   : > { %v3365_v3 = vpack.c.bf16 %v2671_v34, %v2671_v34  ;;  %v2672_v4 = vmax.f32 %v2640_v36, 0.0  ;;  %v3725_v13 = vadd.f32 %v3695_v50, %v3593_v48  ;;  %v1798_v37 = vpop.f32.mrb[45].mxu0  ;;  %v2392_v61 = vpop.f32.mrb[17].mxu1 }
 0x18d   : > { %v3361_v14 = vpack.c.bf16 %v2669_v40, %v2669_v40  ;;  %v2670_v26 = vmax.f32 %v2638_v47, 0.0  ;;  %v3726_v33 = vadd.f32 %v2376_v6, %v1798_v37  ;;  %v3594_v39 = vpop.f32.mrb[46].mxu0  ;;  %v3700_v62 = vpop.f32.mrb[18].mxu1 }
 0x18e   : > { %2972 = vst.msk [vmem:[%s4681_s22 + $0x58] sm:$0xf] %vm2949_vm2, %v3365_v3  ;;  %v3366_v9 = vpack.c.bf16 %v2672_v4, %v2672_v4  ;;  %v2611_v23 = vmul.f32 %v3725_v13, %v4663_v18  ;;  %v3727_v17 = vadd.f32 %v3696_v32, %v3594_v39  ;;  %v1801_v49 = vpop.f32.mrb[47].mxu0  ;;  %v2395_v42 = vpop.f32.mrb[19].mxu1 }
 0x18f   : > { %2968 = vst.msk [vmem:[%s4681_s22 + $0x48] sm:$0xf] %vm2949_vm2, %v3361_v14  ;;  %v3362_v29 = vpack.c.bf16 %v2670_v26, %v2670_v26  ;;  %v2609_v5 = vmul.f32 %v3726_v33, %v4663_v18  ;;  %v3728_v56 = vadd.f32 %v2379_v54, %v1801_v49 }
 0x190   : > { %2973 = vst.msk [vmem:[%s4681_s22 + $0x5c] sm:$0xf] %vm2949_vm2, %v3366_v9  ;;  %v2643_v60 = vadd.f32 %v4668_v11, %v2611_v23  ;;  %v2612_v19 = vmul.f32 %v3727_v17, %v4663_v18 }
 0x191   : > { %2969 = vst.msk [vmem:[%s4681_s22 + $0x4c] sm:$0xf] %vm2949_vm2, %v3362_v29  ;;  %v2641_v57 = vadd.f32 %v4668_v11, %v2609_v5  ;;  %v2610_v31 = vmul.f32 %v3728_v56, %v4663_v18 }
 0x192   : > { %v2675_v30 = vmax.f32 %v2643_v60, 0.0  ;;  %v2644_v45 = vadd.f32 %v4668_v11, %v2612_v19 }
 0x193   : > { %v2673_v44 = vmax.f32 %v2641_v57, 0.0  ;;  %v2642_v38 = vadd.f32 %v4668_v11, %v2610_v31  ;;  %v3597_v28 = vpop.f32.mrb[48].mxu0  ;;  %v3703_v53 = vpop.f32.mrb[20].mxu1 }
 0x194   : > { %v3373_v63 = vpack.c.bf16 %v2675_v30, %v2675_v30  ;;  %v2676_v7 = vmax.f32 %v2644_v45, 0.0  ;;  %v3729_v12 = vadd.f32 %v3699_v58, %v3597_v28  ;;  %v1814_v20 = vpop.f32.mrb[49].mxu0  ;;  %v2408_v8 = vpop.f32.mrb[21].mxu1 }
 0x195   : > { %v3369_v50 = vpack.c.bf16 %v2673_v44, %v2673_v44  ;;  %v2674_v55 = vmax.f32 %v2642_v38, 0.0  ;;  %v3730_v10 = vadd.f32 %v2392_v61, %v1814_v20  ;;  %v3598_v43 = vpop.f32.mrb[50].mxu0  ;;  %v3704_v35 = vpop.f32.mrb[22].mxu1 }
 0x196   : > { %2980 = vst.msk [vmem:[%s4681_s22 + $0x78] sm:$0xf] %vm2949_vm2, %v3373_v63  ;;  %v3374_v6 = vpack.c.bf16 %v2676_v7, %v2676_v7  ;;  %v2615_v21 = vmul.f32 %v3729_v12, %v4663_v18  ;;  %v3731_v22 = vadd.f32 %v3700_v62, %v3598_v43  ;;  %v1817_v24 = vpop.f32.mrb[51].mxu0  ;;  %v2411_v25 = vpop.f32.mrb[23].mxu1 }
 0x197   : > { %2976 = vst.msk [vmem:[%s4681_s22 + $0x68] sm:$0xf] %vm2949_vm2, %v3369_v50  ;;  %v3370_v32 = vpack.c.bf16 %v2674_v55, %v2674_v55  ;;  %v2613_v41 = vmul.f32 %v3730_v10, %v4663_v18  ;;  %v3732_v46 = vadd.f32 %v2395_v42, %v1817_v24 }
 0x198   : > { %2981 = vst.msk [vmem:[%s4681_s22 + $0x7c] sm:$0xf] %vm2949_vm2, %v3374_v6  ;;  %v2647_v51 = vadd.f32 %v4668_v11, %v2615_v21  ;;  %v2616_v52 = vmul.f32 %v3731_v22, %v4663_v18 }
 0x199   : > { %2977 = vst.msk [vmem:[%s4681_s22 + $0x6c] sm:$0xf] %vm2949_vm2, %v3370_v32  ;;  %v2645_v54 = vadd.f32 %v4668_v11, %v2613_v41  ;;  %v2614_v59 = vmul.f32 %v3732_v46, %v4663_v18 }
 0x19a   : > { %v2679_v0 = vmax.f32 %v2647_v51, 0.0  ;;  %v2648_v1 = vadd.f32 %v4668_v11, %v2616_v52 }
 0x19b   : > { %v2677_v2 = vmax.f32 %v2645_v54, 0.0  ;;  %v2646_v15 = vadd.f32 %v4668_v11, %v2614_v59  ;;  %v3601_v16 = vpop.f32.mrb[52].mxu0  ;;  %v3707_v27 = vpop.f32.mrb[24].mxu1 }
 0x19c   : > { %v3381_v34 = vpack.c.bf16 %v2679_v0, %v2679_v0  ;;  %v2680_v36 = vmax.f32 %v2648_v1, 0.0  ;;  %v3733_v40 = vadd.f32 %v3703_v53, %v3601_v16  ;;  %v1830_v47 = vpop.f32.mrb[53].mxu0  ;;  %v2424_v48 = vpop.f32.mrb[25].mxu1 }
 0x19d   : > { %v3377_v58 = vpack.c.bf16 %v2677_v2, %v2677_v2  ;;  %v2678_v3 = vmax.f32 %v2646_v15, 0.0  ;;  %v3734_v4 = vadd.f32 %v2408_v8, %v1830_v47  ;;  %v3602_v13 = vpop.f32.mrb[54].mxu0  ;;  %v3708_v37 = vpop.f32.mrb[26].mxu1 }
 0x19e   : > { %2988 = vst.msk [vmem:[%s4681_s22 + $0x98] sm:$0xf] %vm2949_vm2, %v3381_v34  ;;  %v3382_v61 = vpack.c.bf16 %v2680_v36, %v2680_v36  ;;  %v2619_v14 = vmul.f32 %v3733_v40, %v4663_v18  ;;  %v3735_v26 = vadd.f32 %v3704_v35, %v3602_v13  ;;  %v1833_v33 = vpop.f32.mrb[55].mxu0  ;;  %v2427_v39 = vpop.f32.mrb[27].mxu1 }
 0x19f   : > { %2984 = vst.msk [vmem:[%s4681_s22 + $0x88] sm:$0xf] %vm2949_vm2, %v3377_v58  ;;  %v3378_v62 = vpack.c.bf16 %v2678_v3, %v2678_v3  ;;  %v2617_v9 = vmul.f32 %v3734_v4, %v4663_v18  ;;  %v3736_v23 = vadd.f32 %v2411_v25, %v1833_v33 }
 0x1a0   : > { %2989 = vst.msk [vmem:[%s4681_s22 + $0x9c] sm:$0xf] %vm2949_vm2, %v3382_v61  ;;  %v2651_v17 = vadd.f32 %v4668_v11, %v2619_v14  ;;  %v2620_v49 = vmul.f32 %v3735_v26, %v4663_v18 }
 0x1a1   : > { %2985 = vst.msk [vmem:[%s4681_s22 + $0x8c] sm:$0xf] %vm2949_vm2, %v3378_v62  ;;  %v2649_v42 = vadd.f32 %v4668_v11, %v2617_v9  ;;  %v2618_v29 = vmul.f32 %v3736_v23, %v4663_v18 }
 0x1a2   : > { %v2683_v5 = vmax.f32 %v2651_v17, 0.0  ;;  %v2652_v56 = vadd.f32 %v4668_v11, %v2620_v49 }
 0x1a3   : > { %v2681_v60 = vmax.f32 %v2649_v42, 0.0  ;;  %v2650_v19 = vadd.f32 %v4668_v11, %v2618_v29  ;;  %v3605_v57 = vpop.f32.mrb[56].mxu0  ;;  %v3711_v31 = vpop.f32.mrb[28].mxu1 }
 0x1a4   : > { %v3389_v30 = vpack.c.bf16 %v2683_v5, %v2683_v5  ;;  %v2684_v45 = vmax.f32 %v2652_v56, 0.0  ;;  %v3737_v44 = vadd.f32 %v3707_v27, %v3605_v57  ;;  %v1846_v38 = vpop.f32.mrb[57].mxu0  ;;  %v2440_v28 = vpop.f32.mrb[29].mxu1 }
 0x1a5   : > { %v3385_v53 = vpack.c.bf16 %v2681_v60, %v2681_v60  ;;  %v2682_v63 = vmax.f32 %v2650_v19, 0.0  ;;  %v3738_v7 = vadd.f32 %v2424_v48, %v1846_v38  ;;  %v3606_v12 = vpop.f32.mrb[58].mxu0  ;;  %v3712_v20 = vpop.f32.mrb[30].mxu1 }
 0x1a6   : > { %2996 = vst.msk [vmem:[%s4681_s22 + $0xb8] sm:$0xf] %vm2949_vm2, %v3389_v30  ;;  %v3390_v8 = vpack.c.bf16 %v2684_v45, %v2684_v45  ;;  %v2623_v50 = vmul.f32 %v3737_v44, %v4663_v18  ;;  %v3739_v55 = vadd.f32 %v3708_v37, %v3606_v12  ;;  %v1849_v10 = vpop.f32.mrb[59].mxu0  ;;  %v2443_v43 = vpop.f32.mrb[31].mxu1 }
 0x1a7   : > { %2992 = vst.msk [vmem:[%s4681_s22 + $0xa8] sm:$0xf] %vm2949_vm2, %v3385_v53  ;;  %v3386_v35 = vpack.c.bf16 %v2682_v63, %v2682_v63  ;;  %v2621_v6 = vmul.f32 %v3738_v7, %v4663_v18  ;;  %v3740_v21 = vadd.f32 %v2427_v39, %v1849_v10 }
 0x1a8   : > { %2997 = vst.msk [vmem:[%s4681_s22 + $0xbc] sm:$0xf] %vm2949_vm2, %v3390_v8  ;;  %v2655_v22 = vadd.f32 %v4668_v11, %v2623_v50  ;;  %v2624_v24 = vmul.f32 %v3739_v55, %v4663_v18 }
 0x1a9   : > { %2993 = vst.msk [vmem:[%s4681_s22 + $0xac] sm:$0xf] %vm2949_vm2, %v3386_v35  ;;  %v2653_v25 = vadd.f32 %v4668_v11, %v2621_v6  ;;  %v2622_v32 = vmul.f32 %v3740_v21, %v4663_v18 }
 0x1aa   : > { %v2687_v41 = vmax.f32 %v2655_v22, 0.0  ;;  %v2656_v46 = vadd.f32 %v4668_v11, %v2624_v24 }
 0x1ab   : > { %v2685_v51 = vmax.f32 %v2653_v25, 0.0  ;;  %v2654_v52 = vadd.f32 %v4668_v11, %v2622_v32  ;;  %v3609_v54 = vpop.f32.mrb[60].mxu0 }
 0x1ac   : > { %v3397_v59 = vpack.c.bf16 %v2687_v41, %v2687_v41  ;;  %v2688_v0 = vmax.f32 %v2656_v46, 0.0  ;;  %v3741_v1 = vadd.f32 %v3711_v31, %v3609_v54  ;;  %v1862_v2 = vpop.f32.mrb[61].mxu0 }
 0x1ad   : > { %v3393_v15 = vpack.c.bf16 %v2685_v51, %v2685_v51  ;;  %v2686_v16 = vmax.f32 %v2654_v52, 0.0  ;;  %v3742_v27 = vadd.f32 %v2440_v28, %v1862_v2  ;;  %v3610_v34 = vpop.f32.mrb[62].mxu0 }
 0x1ae   : > { %3004 = vst.msk [vmem:[%s4681_s22 + $0xd8] sm:$0xf] %vm2949_vm2, %v3397_v59  ;;  %v3398_v36 = vpack.c.bf16 %v2688_v0, %v2688_v0  ;;  %v2627_v40 = vmul.f32 %v3741_v1, %v4663_v18  ;;  %v3743_v47 = vadd.f32 %v3712_v20, %v3610_v34  ;;  %v1865_v48 = vpop.f32.mrb[63].mxu0 }
 0x1af   : > { %3000 = vst.msk [vmem:[%s4681_s22 + $0xc8] sm:$0xf] %vm2949_vm2, %v3393_v15  ;;  %v3394_v58 = vpack.c.bf16 %v2686_v16, %v2686_v16  ;;  %v2625_v3 = vmul.f32 %v3742_v27, %v4663_v18  ;;  %v3744_v4 = vadd.f32 %v2443_v43, %v1865_v48 }
 0x1b0   : > { %3005 = vst.msk [vmem:[%s4681_s22 + $0xdc] sm:$0xf] %vm2949_vm2, %v3398_v36  ;;  %v2659_v13 = vadd.f32 %v4668_v11, %v2627_v40  ;;  %v2628_v37 = vmul.f32 %v3743_v47, %v4663_v18 }
 0x1b1   : > { %3001 = vst.msk [vmem:[%s4681_s22 + $0xcc] sm:$0xf] %vm2949_vm2, %v3394_v58  ;;  %v2657_v61 = vadd.f32 %v4668_v11, %v2625_v3  ;;  %v2626_v14 = vmul.f32 %v3744_v4, %v4663_v18 }
 0x1b2   : > { %v2691_v26 = vmax.f32 %v2659_v13, 0.0  ;;  %v2660_v33 = vadd.f32 %v4668_v11, %v2628_v37 }
 0x1b3   : > { %v2689_v39 = vmax.f32 %v2657_v61, 0.0  ;;  %v2658_v62 = vadd.f32 %v4668_v11, %v2626_v14 }
 0x1b4   : > { %v3405_v9 = vpack.c.bf16 %v2691_v26, %v2691_v26  ;;  %v2692_v23 = vmax.f32 %v2660_v33, 0.0 }
 0x1b5   : > { %v3401_v17 = vpack.c.bf16 %v2689_v39, %v2689_v39  ;;  %v2690_v49 = vmax.f32 %v2658_v62, 0.0 }
 0x1b6   : > { %3012 = vst.msk [vmem:[%s4681_s22 + $0xf8] sm:$0xf] %vm2949_vm2, %v3405_v9  ;;  %v3406_v42 = vpack.c.bf16 %v2692_v23, %v2692_v23 }
 0x1b7   : > { %3008 = vst.msk [vmem:[%s4681_s22 + $0xe8] sm:$0xf] %vm2949_vm2, %v3401_v17  ;;  %v3402_v29 = vpack.c.bf16 %v2690_v49, %v2690_v49 }
 0x1b8   : > { %3013 = vst.msk [vmem:[%s4681_s22 + $0xfc] sm:$0xf] %vm2949_vm2, %v3406_v42 }
 0x1b9   : > { %3009 = vst.msk [vmem:[%s4681_s22 + $0xec] sm:$0xf] %vm2949_vm2, %v3402_v29 }
 0x1ba PF: > { %s15_s20 = sadd.s32 1, %s3912_s20   ;;  %s5121_s18 = smov %s3908_s19 }
 0x1bb   : > { %p12_p5 = scmp.ge.s32.totalorder %s15_s20, 4   ;;  %s5122_s19 = smov %s5124_s1 }
 0x1bd   :  { %14 = sbr.rel (!%p12_p5) target bundleno = 2 (0x2), region = 78 }

</bundles_post_ra>
